<compile_context>
chip_gen: v7x
topology: tpu7x:2x2x1
jax: 0.10.0
libtpu: 0.0.40
codegen_flags: <defaults>
</compile_context>

<pallas_src>
import functools

import jax
import jax.numpy as jnp
from jax import lax
from jax.experimental import pallas as pl
from jax.experimental.pallas import tpu as pltpu


def _bilstm_attn_kernel(
    x_ref, mask_ref,
    wih_ref, b_ref, whh_ref,
    watt1_ref, watt2_ref,
    wi_ref, bi_ref, wf_ref, bf_ref,
    out_ref,
    *, T, B, H,
):
    f32 = jnp.float32
    B2, H4, H8 = 2 * B, 4 * H, 8 * H

    # ---- (1) input projection for all timesteps & both directions: ONE matmul ----
    # x_ref is (T*B, IN), t-major (row = t*B + b); wih_ref is (IN, 8H) = [Wih_f^T | Wih_r^T].
    pre_all = (jnp.dot(x_ref[...], wih_ref[...], preferred_element_type=f32)
               + b_ref[...])                                          # (T*B, 8H)

    whh = whh_ref[...]                                                # (H, 8H) = [Whh_f^T | Whh_r^T]

    # row-direction selector: rows 0:B carry the forward state, rows B:2B the backward state
    dir_sel = jnp.broadcast_to(
        lax.broadcasted_iota(jnp.int32, (B2, 1), 0) < B, (B2, H4))    # (2B, 4H) bool

    mask_s = mask_ref[...]                                            # (T, 2B, 1) float
    valid = jnp.broadcast_to(mask_s > 0.5, (T, B2, H))                # (T, 2B, H) bool

    # ---- (2) fused fwd/bwd recurrence, fully unrolled (T is small & static) ----
    h = jnp.zeros((B2, H), f32)
    c = jnp.zeros((B2, H), f32)
    hs = []
    # NOTE: full unroll is intentional for small static T; for long sequences switch to
    # lax.fori_loop(..., unroll=4) with a VMEM scratch for the per-step outputs.
    for s in range(T):
        tb = T - 1 - s                                                # backward time index
        pre_s = jnp.concatenate(
            [pre_all[s * B:(s + 1) * B, 0:H4],                        # fwd input gates @ time s
             pre_all[tb * B:(tb + 1) * B, H4:H8]], axis=0)            # bwd input gates @ time tb
        ga = jnp.dot(h, whh, preferred_element_type=f32)              # (2B, 8H)
        gates = jnp.where(dir_sel, ga[:, 0:H4], ga[:, H4:H8]) + pre_s  # (2B, 4H), order i,f,g,o
        sig = jax.nn.sigmoid(gates)                                   # one full-width EUP sigmoid
        g_g = jnp.tanh(gates[:, 2 * H:3 * H])
        c_new = sig[:, H:2 * H] * c + sig[:, 0:H] * g_g
        h_new = sig[:, 3 * H:H4] * jnp.tanh(c_new)
        v = valid[s]
        h = jnp.where(v, h_new, h)                                    # freeze state on padded steps
        c = jnp.where(v, c_new, c)
        hs.append(h)

    # ---- (3) assemble xh as a batch-major 2D slab (no reshapes, no scratch stores) ----
    maskf = mask_s[:, 0:B, :]                                         # (T, B, 1): 1.0 iff t < len[b]
    xh_blocks = []
    for b in range(B):
        fwd = jnp.concatenate([hs[t][b:b + 1, :] for t in range(T)], axis=0)                # (T, H)
        bwd = jnp.concatenate([hs[T - 1 - t][B + b:B + b + 1, :] for t in range(T)], axis=0)  # (T, H)
        xh_blocks.append(jnp.concatenate([fwd, bwd], axis=1) * maskf[:, b, :])              # (T, 2H)
    xh = jnp.concatenate(xh_blocks, axis=0)                           # (B*T, 2H), batch-major

    # ---- (4) attention: projections batched over all B*T rows ----
    att_in = jnp.tanh(jnp.dot(xh, watt1_ref[...], preferred_element_type=f32))   # (B*T, HA)
    logits = jnp.dot(att_in, watt2_ref[...], preferred_element_type=f32)         # (B*T, OA)

    wi, bi = wi_ref[...], bi_ref[...]                                 # (OA, 2), (1, 2)
    wf, bf = wf_ref[...], bf_ref[...]                                 # (2H, 2), (1, 2)

    # ---- (5) per-sequence softmax over time, context matrix M, fused v/a heads ----
    out_rows = []
    for b in range(B):
        lg = logits[b * T:(b + 1) * T, :]                             # (T, OA)
        mx = jnp.max(lg, axis=0, keepdims=True)
        e = jnp.exp(lg - mx)
        att = e / jnp.sum(e, axis=0, keepdims=True)                   # softmax over time
        xh_b = xh_blocks[b]                                           # (T, 2H), already masked
        M_b = lax.dot_general(xh_b, att, (((0,), (0,)), ((), ())),
                              preferred_element_type=f32)             # (2H, OA) = xh_b^T @ att
        inner = jnp.maximum(
            jnp.dot(M_b, wi, preferred_element_type=f32) + bi, 0.0)   # (2H, 2): col0=v, col1=a
        out_rows.append(jnp.sum(inner * wf, axis=0, keepdims=True) + bf)  # (1, 2)

    out_ref[...] = jnp.concatenate(out_rows, axis=0)                  # (B, 2): col0=output_v, col1=output_a


def init_params(key, input_size, hidden_lstm, hidden_att, out_att):
    H = hidden_lstm
    shapes = {
        "w_ih_f": (4 * H, input_size), "w_hh_f": (4 * H, H),
        "b_ih_f": (4 * H,), "b_hh_f": (4 * H,),
        "w_ih_r": (4 * H, input_size), "w_hh_r": (4 * H, H),
        "b_ih_r": (4 * H,), "b_hh_r": (4 * H,),
        "att1_w": (hidden_att, 2 * H),
        "att2_w": (out_att, hidden_att),
        "v_inner_w": (1, out_att), "v_inner_b": (1,),
        "v_final_w": (1, 2 * H), "v_final_b": (1,),
        "a_inner_w": (1, out_att), "a_inner_b": (1,),
        "a_final_w": (1, 2 * H), "a_final_b": (1,),
    }
    params = {}
    keys = jax.random.split(key, len(shapes))
    for k_, (name, shp) in zip(keys, sorted(shapes.items())):
        params[name] = jax.random.uniform(k_, shp, jnp.float32, -0.1, 0.1)
    return params


@jax.jit
def multitask_bilstm_attention(params, x, lengths):
    f32 = jnp.float32
    T, B, IN = x.shape
    H = params["w_hh_f"].shape[1]

    # validity mask stacked for the fused fwd/bwd recurrence:
    # rows 0:B use time t (forward), rows B:2B use time T-1-t (backward).
    m = (jnp.arange(T)[:, None] < lengths[None, :]).astype(f32)                    # (T, B)
    mask_s = jnp.concatenate([m, m[::-1]], axis=1)[:, :, None]                     # (T, 2B, 1)

    # glue: pre-transpose / fuse weights so the kernel only does row-major matmuls
    wih_all = jnp.concatenate([params["w_ih_f"].T, params["w_ih_r"].T], axis=1)    # (IN, 8H)
    b_all = jnp.concatenate([params["b_ih_f"] + params["b_hh_f"],
                             params["b_ih_r"] + params["b_hh_r"]])[None, :]        # (1, 8H)
    whh_both = jnp.concatenate([params["w_hh_f"].T, params["w_hh_r"].T], axis=1)   # (H, 8H)

    wi_both = jnp.concatenate([params["v_inner_w"].T, params["a_inner_w"].T], axis=1)  # (OA, 2)
    bi_both = jnp.concatenate([params["v_inner_b"], params["a_inner_b"]])[None, :]     # (1, 2)
    wf_both = jnp.concatenate([params["v_final_w"].T, params["a_final_w"].T], axis=1)  # (2H, 2)
    bf_both = jnp.concatenate([params["v_final_b"], params["a_final_b"]])[None, :]     # (1, 2)

    x2 = x.astype(f32).reshape(T * B, IN)        # t-major rows: row index = t*B + b

    kernel = functools.partial(_bilstm_attn_kernel, T=T, B=B, H=H)

    out = pl.pallas_call(
        kernel,
        out_shape=jax.ShapeDtypeStruct((B, 2), f32),
        in_specs=[pl.BlockSpec(memory_space=pltpu.MemorySpace.VMEM)] * 11,
        out_specs=pl.BlockSpec(memory_space=pltpu.MemorySpace.VMEM),
    )(x2, mask_s, wih_all, b_all, whh_both,
      params["att1_w"].T, params["att2_w"].T,
      wi_both, bi_both, wf_both, bf_both)

    return out[:, 0], out[:, 1]                  # (output_v, output_a), each (B,)


if __name__ == "__main__":
    # small shapes consistent with the module's forward
    T, B, IN = 8, 2, 16          # seq len, batch, input_size
    H, HA, OA = 32, 32, 8        # hidden_lstm, hidden_att, out_att

    key = jax.random.PRNGKey(0)
    k_param, k_x = jax.random.split(key)
    params = init_params(k_param, IN, H, HA, OA)

    x = jax.random.normal(k_x, (T, B, IN), jnp.float32)
    lengths = jnp.array([8, 6], dtype=jnp.int32)   # sorted descending, max == T

    out_v, out_a = multitask_bilstm_attention(params, x, lengths)
    jax.block_until_ready((out_v, out_a))
    assert out_v.shape == (B,) and out_a.shape == (B,)
    print("KERNEL_OK")
</pallas_src>

<mosaic_0001>
module attributes {stable_mosaic.version = 11 : i64} {
  func.func @_bilstm_attn_kernel(%arg0: memref<16x16xf32, #tpu.memory_space<vmem>>, %arg1: memref<8x4x1xf32, #tpu.memory_space<vmem>>, %arg2: memref<16x256xf32, #tpu.memory_space<vmem>>, %arg3: memref<1x256xf32, #tpu.memory_space<vmem>>, %arg4: memref<32x256xf32, #tpu.memory_space<vmem>>, %arg5: memref<64x32xf32, #tpu.memory_space<vmem>>, %arg6: memref<32x8xf32, #tpu.memory_space<vmem>>, %arg7: memref<8x2xf32, #tpu.memory_space<vmem>>, %arg8: memref<1x2xf32, #tpu.memory_space<vmem>>, %arg9: memref<64x2xf32, #tpu.memory_space<vmem>>, %arg10: memref<1x2xf32, #tpu.memory_space<vmem>>, %arg11: memref<2x2xf32, #tpu.memory_space<vmem>>) attributes {dimension_semantics = [], scalar_prefetch = 0 : i64, scratch_operands = 0 : i64, tpu.core_type = #tpu.core_type<tc>} {
    %c0 = arith.constant 0 : index
    %c0_0 = arith.constant 0 : index
    %0 = vector.load %arg0[%c0, %c0_0] : memref<16x16xf32, #tpu.memory_space<vmem>>, vector<16x16xf32>
    %c0_1 = arith.constant 0 : index
    %c0_2 = arith.constant 0 : index
    %1 = vector.load %arg2[%c0_1, %c0_2] : memref<16x256xf32, #tpu.memory_space<vmem>>, vector<16x256xf32>
    %cst = arith.constant dense<0.000000e+00> : vector<16x256xf32>
    %2 = tpu.matmul %0, %1, %cst {dimension_numbers = #tpu.dot_dimension_numbers<[1], [0], [0], [1], [0, 0, 1, 1], [], []>} : vector<16x16xf32>, vector<16x256xf32>, vector<16x256xf32> -> vector<16x256xf32>
    %c0_3 = arith.constant 0 : index
    %c0_4 = arith.constant 0 : index
    %3 = vector.load %arg3[%c0_3, %c0_4] : memref<1x256xf32, #tpu.memory_space<vmem>>, vector<1x256xf32>
    %4 = vector.broadcast %3 : vector<1x256xf32> to vector<16x256xf32>
    %5 = arith.addf %2, %4 : vector<16x256xf32>
    %c0_5 = arith.constant 0 : index
    %c0_6 = arith.constant 0 : index
    %6 = vector.load %arg4[%c0_5, %c0_6] : memref<32x256xf32, #tpu.memory_space<vmem>>, vector<32x256xf32>
    %7 = tpu.iota {dimensions = array<i32: 0>} : vector<4x1xi32>
    %c2_i32 = arith.constant 2 : i32
    %8 = vector.broadcast %c2_i32 : i32 to vector<4x1xi32>
    %9 = arith.cmpi slt, %7, %8 : vector<4x1xi32>
    %10 = vector.shape_cast %9 : vector<4x1xi1> to vector<4x1xi1>
    %11 = vector.broadcast %10 : vector<4x1xi1> to vector<4x128xi1>
    %c0_7 = arith.constant 0 : index
    %c0_8 = arith.constant 0 : index
    %c0_9 = arith.constant 0 : index
    %12 = vector.load %arg1[%c0_7, %c0_8, %c0_9] : memref<8x4x1xf32, #tpu.memory_space<vmem>>, vector<8x4x1xf32>
    %cst_10 = arith.constant 5.000000e-01 : f32
    %13 = vector.broadcast %cst_10 : f32 to vector<8x4x1xf32>
    %14 = arith.cmpf ogt, %12, %13 : vector<8x4x1xf32>
    %15 = vector.shape_cast %14 : vector<8x4x1xi1> to vector<8x4x1xi1>
    %16 = vector.broadcast %15 : vector<8x4x1xi1> to vector<8x4x32xi1>
    %cst_11 = arith.constant 0.000000e+00 : f32
    %17 = vector.broadcast %cst_11 : f32 to vector<4x32xf32>
    %cst_12 = arith.constant 0.000000e+00 : f32
    %18 = vector.broadcast %cst_12 : f32 to vector<4x32xf32>
    %19 = vector.extract_strided_slice %5 {offsets = [0, 0], sizes = [2, 128], strides = [1, 1]} : vector<16x256xf32> to vector<2x128xf32>
    %20 = vector.extract_strided_slice %5 {offsets = [14, 128], sizes = [2, 128], strides = [1, 1]} : vector<16x256xf32> to vector<2x128xf32>
    %21 = tpu.concatenate %19, %20 in 0 : vector<2x128xf32>, vector<2x128xf32> -> vector<4x128xf32>
    %cst_13 = arith.constant dense<0.000000e+00> : vector<4x256xf32>
    %22 = tpu.matmul %17, %6, %cst_13 {dimension_numbers = #tpu.dot_dimension_numbers<[1], [0], [0], [1], [0, 0, 1, 1], [], []>} : vector<4x32xf32>, vector<32x256xf32>, vector<4x256xf32> -> vector<4x256xf32>
    %23 = vector.extract_strided_slice %22 {offsets = [0, 0], sizes = [4, 128], strides = [1, 1]} : vector<4x256xf32> to vector<4x128xf32>
    %24 = vector.extract_strided_slice %22 {offsets = [0, 128], sizes = [4, 128], strides = [1, 1]} : vector<4x256xf32> to vector<4x128xf32>
    %25 = arith.select %11, %23, %24 : vector<4x128xi1>, vector<4x128xf32>
    %26 = arith.addf %25, %21 : vector<4x128xf32>
    %27 = arith.negf %26 : vector<4x128xf32>
    %28 = math.exp %27 : vector<4x128xf32>
    %cst_14 = arith.constant 1.000000e+00 : f32
    %29 = vector.broadcast %cst_14 : f32 to vector<4x128xf32>
    %30 = arith.addf %29, %28 : vector<4x128xf32>
    %31 = arith.divf %29, %30 : vector<4x128xf32>
    %32 = vector.extract_strided_slice %26 {offsets = [0, 64], sizes = [4, 32], strides = [1, 1]} : vector<4x128xf32> to vector<4x32xf32>
    %33 = math.tanh %32 : vector<4x32xf32>
    %34 = vector.extract_strided_slice %31 {offsets = [0, 32], sizes = [4, 32], strides = [1, 1]} : vector<4x128xf32> to vector<4x32xf32>
    %35 = arith.mulf %34, %18 : vector<4x32xf32>
    %36 = vector.extract_strided_slice %31 {offsets = [0, 0], sizes = [4, 32], strides = [1, 1]} : vector<4x128xf32> to vector<4x32xf32>
    %37 = arith.mulf %36, %33 : vector<4x32xf32>
    %38 = arith.addf %35, %37 : vector<4x32xf32>
    %39 = vector.extract_strided_slice %31 {offsets = [0, 96], sizes = [4, 32], strides = [1, 1]} : vector<4x128xf32> to vector<4x32xf32>
    %40 = math.tanh %38 : vector<4x32xf32>
    %41 = arith.mulf %39, %40 : vector<4x32xf32>
    %42 = vector.extract_strided_slice %16 {offsets = [0, 0, 0], sizes = [1, 4, 32], strides = [1, 1, 1]} : vector<8x4x32xi1> to vector<1x4x32xi1>
    %43 = vector.shape_cast %42 : vector<1x4x32xi1> to vector<4x32xi1>
    %44 = arith.select %43, %41, %17 : vector<4x32xi1>, vector<4x32xf32>
    %45 = arith.select %43, %38, %18 : vector<4x32xi1>, vector<4x32xf32>
    %46 = vector.extract_strided_slice %5 {offsets = [2, 0], sizes = [2, 128], strides = [1, 1]} : vector<16x256xf32> to vector<2x128xf32>
    %47 = vector.extract_strided_slice %5 {offsets = [12, 128], sizes = [2, 128], strides = [1, 1]} : vector<16x256xf32> to vector<2x128xf32>
    %48 = tpu.concatenate %46, %47 in 0 : vector<2x128xf32>, vector<2x128xf32> -> vector<4x128xf32>
    %cst_15 = arith.constant dense<0.000000e+00> : vector<4x256xf32>
    %49 = tpu.matmul %44, %6, %cst_15 {dimension_numbers = #tpu.dot_dimension_numbers<[1], [0], [0], [1], [0, 0, 1, 1], [], []>} : vector<4x32xf32>, vector<32x256xf32>, vector<4x256xf32> -> vector<4x256xf32>
    %50 = vector.extract_strided_slice %49 {offsets = [0, 0], sizes = [4, 128], strides = [1, 1]} : vector<4x256xf32> to vector<4x128xf32>
    %51 = vector.extract_strided_slice %49 {offsets = [0, 128], sizes = [4, 128], strides = [1, 1]} : vector<4x256xf32> to vector<4x128xf32>
    %52 = arith.select %11, %50, %51 : vector<4x128xi1>, vector<4x128xf32>
    %53 = arith.addf %52, %48 : vector<4x128xf32>
    %54 = arith.negf %53 : vector<4x128xf32>
    %55 = math.exp %54 : vector<4x128xf32>
    %cst_16 = arith.constant 1.000000e+00 : f32
    %56 = vector.broadcast %cst_16 : f32 to vector<4x128xf32>
    %57 = arith.addf %56, %55 : vector<4x128xf32>
    %58 = arith.divf %56, %57 : vector<4x128xf32>
    %59 = vector.extract_strided_slice %53 {offsets = [0, 64], sizes = [4, 32], strides = [1, 1]} : vector<4x128xf32> to vector<4x32xf32>
    %60 = math.tanh %59 : vector<4x32xf32>
    %61 = vector.extract_strided_slice %58 {offsets = [0, 32], sizes = [4, 32], strides = [1, 1]} : vector<4x128xf32> to vector<4x32xf32>
    %62 = arith.mulf %61, %45 : vector<4x32xf32>
    %63 = vector.extract_strided_slice %58 {offsets = [0, 0], sizes = [4, 32], strides = [1, 1]} : vector<4x128xf32> to vector<4x32xf32>
    %64 = arith.mulf %63, %60 : vector<4x32xf32>
    %65 = arith.addf %62, %64 : vector<4x32xf32>
    %66 = vector.extract_strided_slice %58 {offsets = [0, 96], sizes = [4, 32], strides = [1, 1]} : vector<4x128xf32> to vector<4x32xf32>
    %67 = math.tanh %65 : vector<4x32xf32>
    %68 = arith.mulf %66, %67 : vector<4x32xf32>
    %69 = vector.extract_strided_slice %16 {offsets = [1, 0, 0], sizes = [1, 4, 32], strides = [1, 1, 1]} : vector<8x4x32xi1> to vector<1x4x32xi1>
    %70 = vector.shape_cast %69 : vector<1x4x32xi1> to vector<4x32xi1>
    %71 = arith.select %70, %68, %44 : vector<4x32xi1>, vector<4x32xf32>
    %72 = arith.select %70, %65, %45 : vector<4x32xi1>, vector<4x32xf32>
    %73 = vector.extract_strided_slice %5 {offsets = [4, 0], sizes = [2, 128], strides = [1, 1]} : vector<16x256xf32> to vector<2x128xf32>
    %74 = vector.extract_strided_slice %5 {offsets = [10, 128], sizes = [2, 128], strides = [1, 1]} : vector<16x256xf32> to vector<2x128xf32>
    %75 = tpu.concatenate %73, %74 in 0 : vector<2x128xf32>, vector<2x128xf32> -> vector<4x128xf32>
    %cst_17 = arith.constant dense<0.000000e+00> : vector<4x256xf32>
    %76 = tpu.matmul %71, %6, %cst_17 {dimension_numbers = #tpu.dot_dimension_numbers<[1], [0], [0], [1], [0, 0, 1, 1], [], []>} : vector<4x32xf32>, vector<32x256xf32>, vector<4x256xf32> -> vector<4x256xf32>
    %77 = vector.extract_strided_slice %76 {offsets = [0, 0], sizes = [4, 128], strides = [1, 1]} : vector<4x256xf32> to vector<4x128xf32>
    %78 = vector.extract_strided_slice %76 {offsets = [0, 128], sizes = [4, 128], strides = [1, 1]} : vector<4x256xf32> to vector<4x128xf32>
    %79 = arith.select %11, %77, %78 : vector<4x128xi1>, vector<4x128xf32>
    %80 = arith.addf %79, %75 : vector<4x128xf32>
    %81 = arith.negf %80 : vector<4x128xf32>
    %82 = math.exp %81 : vector<4x128xf32>
    %cst_18 = arith.constant 1.000000e+00 : f32
    %83 = vector.broadcast %cst_18 : f32 to vector<4x128xf32>
    %84 = arith.addf %83, %82 : vector<4x128xf32>
    %85 = arith.divf %83, %84 : vector<4x128xf32>
    %86 = vector.extract_strided_slice %80 {offsets = [0, 64], sizes = [4, 32], strides = [1, 1]} : vector<4x128xf32> to vector<4x32xf32>
    %87 = math.tanh %86 : vector<4x32xf32>
    %88 = vector.extract_strided_slice %85 {offsets = [0, 32], sizes = [4, 32], strides = [1, 1]} : vector<4x128xf32> to vector<4x32xf32>
    %89 = arith.mulf %88, %72 : vector<4x32xf32>
    %90 = vector.extract_strided_slice %85 {offsets = [0, 0], sizes = [4, 32], strides = [1, 1]} : vector<4x128xf32> to vector<4x32xf32>
    %91 = arith.mulf %90, %87 : vector<4x32xf32>
    %92 = arith.addf %89, %91 : vector<4x32xf32>
    %93 = vector.extract_strided_slice %85 {offsets = [0, 96], sizes = [4, 32], strides = [1, 1]} : vector<4x128xf32> to vector<4x32xf32>
    %94 = math.tanh %92 : vector<4x32xf32>
    %95 = arith.mulf %93, %94 : vector<4x32xf32>
    %96 = vector.extract_strided_slice %16 {offsets = [2, 0, 0], sizes = [1, 4, 32], strides = [1, 1, 1]} : vector<8x4x32xi1> to vector<1x4x32xi1>
    %97 = vector.shape_cast %96 : vector<1x4x32xi1> to vector<4x32xi1>
    %98 = arith.select %97, %95, %71 : vector<4x32xi1>, vector<4x32xf32>
    %99 = arith.select %97, %92, %72 : vector<4x32xi1>, vector<4x32xf32>
    %100 = vector.extract_strided_slice %5 {offsets = [6, 0], sizes = [2, 128], strides = [1, 1]} : vector<16x256xf32> to vector<2x128xf32>
    %101 = vector.extract_strided_slice %5 {offsets = [8, 128], sizes = [2, 128], strides = [1, 1]} : vector<16x256xf32> to vector<2x128xf32>
    %102 = tpu.concatenate %100, %101 in 0 : vector<2x128xf32>, vector<2x128xf32> -> vector<4x128xf32>
    %cst_19 = arith.constant dense<0.000000e+00> : vector<4x256xf32>
    %103 = tpu.matmul %98, %6, %cst_19 {dimension_numbers = #tpu.dot_dimension_numbers<[1], [0], [0], [1], [0, 0, 1, 1], [], []>} : vector<4x32xf32>, vector<32x256xf32>, vector<4x256xf32> -> vector<4x256xf32>
    %104 = vector.extract_strided_slice %103 {offsets = [0, 0], sizes = [4, 128], strides = [1, 1]} : vector<4x256xf32> to vector<4x128xf32>
    %105 = vector.extract_strided_slice %103 {offsets = [0, 128], sizes = [4, 128], strides = [1, 1]} : vector<4x256xf32> to vector<4x128xf32>
    %106 = arith.select %11, %104, %105 : vector<4x128xi1>, vector<4x128xf32>
    %107 = arith.addf %106, %102 : vector<4x128xf32>
    %108 = arith.negf %107 : vector<4x128xf32>
    %109 = math.exp %108 : vector<4x128xf32>
    %cst_20 = arith.constant 1.000000e+00 : f32
    %110 = vector.broadcast %cst_20 : f32 to vector<4x128xf32>
    %111 = arith.addf %110, %109 : vector<4x128xf32>
    %112 = arith.divf %110, %111 : vector<4x128xf32>
    %113 = vector.extract_strided_slice %107 {offsets = [0, 64], sizes = [4, 32], strides = [1, 1]} : vector<4x128xf32> to vector<4x32xf32>
    %114 = math.tanh %113 : vector<4x32xf32>
    %115 = vector.extract_strided_slice %112 {offsets = [0, 32], sizes = [4, 32], strides = [1, 1]} : vector<4x128xf32> to vector<4x32xf32>
    %116 = arith.mulf %115, %99 : vector<4x32xf32>
    %117 = vector.extract_strided_slice %112 {offsets = [0, 0], sizes = [4, 32], strides = [1, 1]} : vector<4x128xf32> to vector<4x32xf32>
    %118 = arith.mulf %117, %114 : vector<4x32xf32>
    %119 = arith.addf %116, %118 : vector<4x32xf32>
    %120 = vector.extract_strided_slice %112 {offsets = [0, 96], sizes = [4, 32], strides = [1, 1]} : vector<4x128xf32> to vector<4x32xf32>
    %121 = math.tanh %119 : vector<4x32xf32>
    %122 = arith.mulf %120, %121 : vector<4x32xf32>
    %123 = vector.extract_strided_slice %16 {offsets = [3, 0, 0], sizes = [1, 4, 32], strides = [1, 1, 1]} : vector<8x4x32xi1> to vector<1x4x32xi1>
    %124 = vector.shape_cast %123 : vector<1x4x32xi1> to vector<4x32xi1>
    %125 = arith.select %124, %122, %98 : vector<4x32xi1>, vector<4x32xf32>
    %126 = arith.select %124, %119, %99 : vector<4x32xi1>, vector<4x32xf32>
    %127 = vector.extract_strided_slice %5 {offsets = [8, 0], sizes = [2, 128], strides = [1, 1]} : vector<16x256xf32> to vector<2x128xf32>
    %128 = vector.extract_strided_slice %5 {offsets = [6, 128], sizes = [2, 128], strides = [1, 1]} : vector<16x256xf32> to vector<2x128xf32>
    %129 = tpu.concatenate %127, %128 in 0 : vector<2x128xf32>, vector<2x128xf32> -> vector<4x128xf32>
    %cst_21 = arith.constant dense<0.000000e+00> : vector<4x256xf32>
    %130 = tpu.matmul %125, %6, %cst_21 {dimension_numbers = #tpu.dot_dimension_numbers<[1], [0], [0], [1], [0, 0, 1, 1], [], []>} : vector<4x32xf32>, vector<32x256xf32>, vector<4x256xf32> -> vector<4x256xf32>
    %131 = vector.extract_strided_slice %130 {offsets = [0, 0], sizes = [4, 128], strides = [1, 1]} : vector<4x256xf32> to vector<4x128xf32>
    %132 = vector.extract_strided_slice %130 {offsets = [0, 128], sizes = [4, 128], strides = [1, 1]} : vector<4x256xf32> to vector<4x128xf32>
    %133 = arith.select %11, %131, %132 : vector<4x128xi1>, vector<4x128xf32>
    %134 = arith.addf %133, %129 : vector<4x128xf32>
    %135 = arith.negf %134 : vector<4x128xf32>
    %136 = math.exp %135 : vector<4x128xf32>
    %cst_22 = arith.constant 1.000000e+00 : f32
    %137 = vector.broadcast %cst_22 : f32 to vector<4x128xf32>
    %138 = arith.addf %137, %136 : vector<4x128xf32>
    %139 = arith.divf %137, %138 : vector<4x128xf32>
    %140 = vector.extract_strided_slice %134 {offsets = [0, 64], sizes = [4, 32], strides = [1, 1]} : vector<4x128xf32> to vector<4x32xf32>
    %141 = math.tanh %140 : vector<4x32xf32>
    %142 = vector.extract_strided_slice %139 {offsets = [0, 32], sizes = [4, 32], strides = [1, 1]} : vector<4x128xf32> to vector<4x32xf32>
    %143 = arith.mulf %142, %126 : vector<4x32xf32>
    %144 = vector.extract_strided_slice %139 {offsets = [0, 0], sizes = [4, 32], strides = [1, 1]} : vector<4x128xf32> to vector<4x32xf32>
    %145 = arith.mulf %144, %141 : vector<4x32xf32>
    %146 = arith.addf %143, %145 : vector<4x32xf32>
    %147 = vector.extract_strided_slice %139 {offsets = [0, 96], sizes = [4, 32], strides = [1, 1]} : vector<4x128xf32> to vector<4x32xf32>
    %148 = math.tanh %146 : vector<4x32xf32>
    %149 = arith.mulf %147, %148 : vector<4x32xf32>
    %150 = vector.extract_strided_slice %16 {offsets = [4, 0, 0], sizes = [1, 4, 32], strides = [1, 1, 1]} : vector<8x4x32xi1> to vector<1x4x32xi1>
    %151 = vector.shape_cast %150 : vector<1x4x32xi1> to vector<4x32xi1>
    %152 = arith.select %151, %149, %125 : vector<4x32xi1>, vector<4x32xf32>
    %153 = arith.select %151, %146, %126 : vector<4x32xi1>, vector<4x32xf32>
    %154 = vector.extract_strided_slice %5 {offsets = [10, 0], sizes = [2, 128], strides = [1, 1]} : vector<16x256xf32> to vector<2x128xf32>
    %155 = vector.extract_strided_slice %5 {offsets = [4, 128], sizes = [2, 128], strides = [1, 1]} : vector<16x256xf32> to vector<2x128xf32>
    %156 = tpu.concatenate %154, %155 in 0 : vector<2x128xf32>, vector<2x128xf32> -> vector<4x128xf32>
    %cst_23 = arith.constant dense<0.000000e+00> : vector<4x256xf32>
    %157 = tpu.matmul %152, %6, %cst_23 {dimension_numbers = #tpu.dot_dimension_numbers<[1], [0], [0], [1], [0, 0, 1, 1], [], []>} : vector<4x32xf32>, vector<32x256xf32>, vector<4x256xf32> -> vector<4x256xf32>
    %158 = vector.extract_strided_slice %157 {offsets = [0, 0], sizes = [4, 128], strides = [1, 1]} : vector<4x256xf32> to vector<4x128xf32>
    %159 = vector.extract_strided_slice %157 {offsets = [0, 128], sizes = [4, 128], strides = [1, 1]} : vector<4x256xf32> to vector<4x128xf32>
    %160 = arith.select %11, %158, %159 : vector<4x128xi1>, vector<4x128xf32>
    %161 = arith.addf %160, %156 : vector<4x128xf32>
    %162 = arith.negf %161 : vector<4x128xf32>
    %163 = math.exp %162 : vector<4x128xf32>
    %cst_24 = arith.constant 1.000000e+00 : f32
    %164 = vector.broadcast %cst_24 : f32 to vector<4x128xf32>
    %165 = arith.addf %164, %163 : vector<4x128xf32>
    %166 = arith.divf %164, %165 : vector<4x128xf32>
    %167 = vector.extract_strided_slice %161 {offsets = [0, 64], sizes = [4, 32], strides = [1, 1]} : vector<4x128xf32> to vector<4x32xf32>
    %168 = math.tanh %167 : vector<4x32xf32>
    %169 = vector.extract_strided_slice %166 {offsets = [0, 32], sizes = [4, 32], strides = [1, 1]} : vector<4x128xf32> to vector<4x32xf32>
    %170 = arith.mulf %169, %153 : vector<4x32xf32>
    %171 = vector.extract_strided_slice %166 {offsets = [0, 0], sizes = [4, 32], strides = [1, 1]} : vector<4x128xf32> to vector<4x32xf32>
    %172 = arith.mulf %171, %168 : vector<4x32xf32>
    %173 = arith.addf %170, %172 : vector<4x32xf32>
    %174 = vector.extract_strided_slice %166 {offsets = [0, 96], sizes = [4, 32], strides = [1, 1]} : vector<4x128xf32> to vector<4x32xf32>
    %175 = math.tanh %173 : vector<4x32xf32>
    %176 = arith.mulf %174, %175 : vector<4x32xf32>
    %177 = vector.extract_strided_slice %16 {offsets = [5, 0, 0], sizes = [1, 4, 32], strides = [1, 1, 1]} : vector<8x4x32xi1> to vector<1x4x32xi1>
    %178 = vector.shape_cast %177 : vector<1x4x32xi1> to vector<4x32xi1>
    %179 = arith.select %178, %176, %152 : vector<4x32xi1>, vector<4x32xf32>
    %180 = arith.select %178, %173, %153 : vector<4x32xi1>, vector<4x32xf32>
    %181 = vector.extract_strided_slice %5 {offsets = [12, 0], sizes = [2, 128], strides = [1, 1]} : vector<16x256xf32> to vector<2x128xf32>
    %182 = vector.extract_strided_slice %5 {offsets = [2, 128], sizes = [2, 128], strides = [1, 1]} : vector<16x256xf32> to vector<2x128xf32>
    %183 = tpu.concatenate %181, %182 in 0 : vector<2x128xf32>, vector<2x128xf32> -> vector<4x128xf32>
    %cst_25 = arith.constant dense<0.000000e+00> : vector<4x256xf32>
    %184 = tpu.matmul %179, %6, %cst_25 {dimension_numbers = #tpu.dot_dimension_numbers<[1], [0], [0], [1], [0, 0, 1, 1], [], []>} : vector<4x32xf32>, vector<32x256xf32>, vector<4x256xf32> -> vector<4x256xf32>
    %185 = vector.extract_strided_slice %184 {offsets = [0, 0], sizes = [4, 128], strides = [1, 1]} : vector<4x256xf32> to vector<4x128xf32>
    %186 = vector.extract_strided_slice %184 {offsets = [0, 128], sizes = [4, 128], strides = [1, 1]} : vector<4x256xf32> to vector<4x128xf32>
    %187 = arith.select %11, %185, %186 : vector<4x128xi1>, vector<4x128xf32>
    %188 = arith.addf %187, %183 : vector<4x128xf32>
    %189 = arith.negf %188 : vector<4x128xf32>
    %190 = math.exp %189 : vector<4x128xf32>
    %cst_26 = arith.constant 1.000000e+00 : f32
    %191 = vector.broadcast %cst_26 : f32 to vector<4x128xf32>
    %192 = arith.addf %191, %190 : vector<4x128xf32>
    %193 = arith.divf %191, %192 : vector<4x128xf32>
    %194 = vector.extract_strided_slice %188 {offsets = [0, 64], sizes = [4, 32], strides = [1, 1]} : vector<4x128xf32> to vector<4x32xf32>
    %195 = math.tanh %194 : vector<4x32xf32>
    %196 = vector.extract_strided_slice %193 {offsets = [0, 32], sizes = [4, 32], strides = [1, 1]} : vector<4x128xf32> to vector<4x32xf32>
    %197 = arith.mulf %196, %180 : vector<4x32xf32>
    %198 = vector.extract_strided_slice %193 {offsets = [0, 0], sizes = [4, 32], strides = [1, 1]} : vector<4x128xf32> to vector<4x32xf32>
    %199 = arith.mulf %198, %195 : vector<4x32xf32>
    %200 = arith.addf %197, %199 : vector<4x32xf32>
    %201 = vector.extract_strided_slice %193 {offsets = [0, 96], sizes = [4, 32], strides = [1, 1]} : vector<4x128xf32> to vector<4x32xf32>
    %202 = math.tanh %200 : vector<4x32xf32>
    %203 = arith.mulf %201, %202 : vector<4x32xf32>
    %204 = vector.extract_strided_slice %16 {offsets = [6, 0, 0], sizes = [1, 4, 32], strides = [1, 1, 1]} : vector<8x4x32xi1> to vector<1x4x32xi1>
    %205 = vector.shape_cast %204 : vector<1x4x32xi1> to vector<4x32xi1>
    %206 = arith.select %205, %203, %179 : vector<4x32xi1>, vector<4x32xf32>
    %207 = arith.select %205, %200, %180 : vector<4x32xi1>, vector<4x32xf32>
    %208 = vector.extract_strided_slice %5 {offsets = [14, 0], sizes = [2, 128], strides = [1, 1]} : vector<16x256xf32> to vector<2x128xf32>
    %209 = vector.extract_strided_slice %5 {offsets = [0, 128], sizes = [2, 128], strides = [1, 1]} : vector<16x256xf32> to vector<2x128xf32>
    %210 = tpu.concatenate %208, %209 in 0 : vector<2x128xf32>, vector<2x128xf32> -> vector<4x128xf32>
    %cst_27 = arith.constant dense<0.000000e+00> : vector<4x256xf32>
    %211 = tpu.matmul %206, %6, %cst_27 {dimension_numbers = #tpu.dot_dimension_numbers<[1], [0], [0], [1], [0, 0, 1, 1], [], []>} : vector<4x32xf32>, vector<32x256xf32>, vector<4x256xf32> -> vector<4x256xf32>
    %212 = vector.extract_strided_slice %211 {offsets = [0, 0], sizes = [4, 128], strides = [1, 1]} : vector<4x256xf32> to vector<4x128xf32>
    %213 = vector.extract_strided_slice %211 {offsets = [0, 128], sizes = [4, 128], strides = [1, 1]} : vector<4x256xf32> to vector<4x128xf32>
    %214 = arith.select %11, %212, %213 : vector<4x128xi1>, vector<4x128xf32>
    %215 = arith.addf %214, %210 : vector<4x128xf32>
    %216 = arith.negf %215 : vector<4x128xf32>
    %217 = math.exp %216 : vector<4x128xf32>
    %cst_28 = arith.constant 1.000000e+00 : f32
    %218 = vector.broadcast %cst_28 : f32 to vector<4x128xf32>
    %219 = arith.addf %218, %217 : vector<4x128xf32>
    %220 = arith.divf %218, %219 : vector<4x128xf32>
    %221 = vector.extract_strided_slice %215 {offsets = [0, 64], sizes = [4, 32], strides = [1, 1]} : vector<4x128xf32> to vector<4x32xf32>
    %222 = math.tanh %221 : vector<4x32xf32>
    %223 = vector.extract_strided_slice %220 {offsets = [0, 32], sizes = [4, 32], strides = [1, 1]} : vector<4x128xf32> to vector<4x32xf32>
    %224 = arith.mulf %223, %207 : vector<4x32xf32>
    %225 = vector.extract_strided_slice %220 {offsets = [0, 0], sizes = [4, 32], strides = [1, 1]} : vector<4x128xf32> to vector<4x32xf32>
    %226 = arith.mulf %225, %222 : vector<4x32xf32>
    %227 = arith.addf %224, %226 : vector<4x32xf32>
    %228 = vector.extract_strided_slice %220 {offsets = [0, 96], sizes = [4, 32], strides = [1, 1]} : vector<4x128xf32> to vector<4x32xf32>
    %229 = math.tanh %227 : vector<4x32xf32>
    %230 = arith.mulf %228, %229 : vector<4x32xf32>
    %231 = vector.extract_strided_slice %16 {offsets = [7, 0, 0], sizes = [1, 4, 32], strides = [1, 1, 1]} : vector<8x4x32xi1> to vector<1x4x32xi1>
    %232 = vector.shape_cast %231 : vector<1x4x32xi1> to vector<4x32xi1>
    %233 = arith.select %232, %230, %206 : vector<4x32xi1>, vector<4x32xf32>
    %234 = vector.extract_strided_slice %12 {offsets = [0, 0, 0], sizes = [8, 2, 1], strides = [1, 1, 1]} : vector<8x4x1xf32> to vector<8x2x1xf32>
    %235 = vector.extract_strided_slice %44 {offsets = [0, 0], sizes = [1, 32], strides = [1, 1]} : vector<4x32xf32> to vector<1x32xf32>
    %236 = vector.extract_strided_slice %71 {offsets = [0, 0], sizes = [1, 32], strides = [1, 1]} : vector<4x32xf32> to vector<1x32xf32>
    %237 = vector.extract_strided_slice %98 {offsets = [0, 0], sizes = [1, 32], strides = [1, 1]} : vector<4x32xf32> to vector<1x32xf32>
    %238 = vector.extract_strided_slice %125 {offsets = [0, 0], sizes = [1, 32], strides = [1, 1]} : vector<4x32xf32> to vector<1x32xf32>
    %239 = vector.extract_strided_slice %152 {offsets = [0, 0], sizes = [1, 32], strides = [1, 1]} : vector<4x32xf32> to vector<1x32xf32>
    %240 = vector.extract_strided_slice %179 {offsets = [0, 0], sizes = [1, 32], strides = [1, 1]} : vector<4x32xf32> to vector<1x32xf32>
    %241 = vector.extract_strided_slice %206 {offsets = [0, 0], sizes = [1, 32], strides = [1, 1]} : vector<4x32xf32> to vector<1x32xf32>
    %242 = vector.extract_strided_slice %233 {offsets = [0, 0], sizes = [1, 32], strides = [1, 1]} : vector<4x32xf32> to vector<1x32xf32>
    %243 = tpu.concatenate %235, %236, %237, %238, %239, %240, %241, %242 in 0 : vector<1x32xf32>, vector<1x32xf32>, vector<1x32xf32>, vector<1x32xf32>, vector<1x32xf32>, vector<1x32xf32>, vector<1x32xf32>, vector<1x32xf32> -> vector<8x32xf32>
    %244 = vector.extract_strided_slice %233 {offsets = [2, 0], sizes = [1, 32], strides = [1, 1]} : vector<4x32xf32> to vector<1x32xf32>
    %245 = vector.extract_strided_slice %206 {offsets = [2, 0], sizes = [1, 32], strides = [1, 1]} : vector<4x32xf32> to vector<1x32xf32>
    %246 = vector.extract_strided_slice %179 {offsets = [2, 0], sizes = [1, 32], strides = [1, 1]} : vector<4x32xf32> to vector<1x32xf32>
    %247 = vector.extract_strided_slice %152 {offsets = [2, 0], sizes = [1, 32], strides = [1, 1]} : vector<4x32xf32> to vector<1x32xf32>
    %248 = vector.extract_strided_slice %125 {offsets = [2, 0], sizes = [1, 32], strides = [1, 1]} : vector<4x32xf32> to vector<1x32xf32>
    %249 = vector.extract_strided_slice %98 {offsets = [2, 0], sizes = [1, 32], strides = [1, 1]} : vector<4x32xf32> to vector<1x32xf32>
    %250 = vector.extract_strided_slice %71 {offsets = [2, 0], sizes = [1, 32], strides = [1, 1]} : vector<4x32xf32> to vector<1x32xf32>
    %251 = vector.extract_strided_slice %44 {offsets = [2, 0], sizes = [1, 32], strides = [1, 1]} : vector<4x32xf32> to vector<1x32xf32>
    %252 = tpu.concatenate %244, %245, %246, %247, %248, %249, %250, %251 in 0 : vector<1x32xf32>, vector<1x32xf32>, vector<1x32xf32>, vector<1x32xf32>, vector<1x32xf32>, vector<1x32xf32>, vector<1x32xf32>, vector<1x32xf32> -> vector<8x32xf32>
    %253 = tpu.concatenate %243, %252 in 1 : vector<8x32xf32>, vector<8x32xf32> -> vector<8x64xf32>
    %254 = vector.extract_strided_slice %234 {offsets = [0, 0, 0], sizes = [8, 1, 1], strides = [1, 1, 1]} : vector<8x2x1xf32> to vector<8x1x1xf32>
    %255 = vector.shape_cast %254 : vector<8x1x1xf32> to vector<8x1xf32>
    %256 = vector.broadcast %255 : vector<8x1xf32> to vector<8x64xf32>
    %257 = arith.mulf %253, %256 : vector<8x64xf32>
    %258 = vector.extract_strided_slice %44 {offsets = [1, 0], sizes = [1, 32], strides = [1, 1]} : vector<4x32xf32> to vector<1x32xf32>
    %259 = vector.extract_strided_slice %71 {offsets = [1, 0], sizes = [1, 32], strides = [1, 1]} : vector<4x32xf32> to vector<1x32xf32>
    %260 = vector.extract_strided_slice %98 {offsets = [1, 0], sizes = [1, 32], strides = [1, 1]} : vector<4x32xf32> to vector<1x32xf32>
    %261 = vector.extract_strided_slice %125 {offsets = [1, 0], sizes = [1, 32], strides = [1, 1]} : vector<4x32xf32> to vector<1x32xf32>
    %262 = vector.extract_strided_slice %152 {offsets = [1, 0], sizes = [1, 32], strides = [1, 1]} : vector<4x32xf32> to vector<1x32xf32>
    %263 = vector.extract_strided_slice %179 {offsets = [1, 0], sizes = [1, 32], strides = [1, 1]} : vector<4x32xf32> to vector<1x32xf32>
    %264 = vector.extract_strided_slice %206 {offsets = [1, 0], sizes = [1, 32], strides = [1, 1]} : vector<4x32xf32> to vector<1x32xf32>
    %265 = vector.extract_strided_slice %233 {offsets = [1, 0], sizes = [1, 32], strides = [1, 1]} : vector<4x32xf32> to vector<1x32xf32>
    %266 = tpu.concatenate %258, %259, %260, %261, %262, %263, %264, %265 in 0 : vector<1x32xf32>, vector<1x32xf32>, vector<1x32xf32>, vector<1x32xf32>, vector<1x32xf32>, vector<1x32xf32>, vector<1x32xf32>, vector<1x32xf32> -> vector<8x32xf32>
    %267 = vector.extract_strided_slice %233 {offsets = [3, 0], sizes = [1, 32], strides = [1, 1]} : vector<4x32xf32> to vector<1x32xf32>
    %268 = vector.extract_strided_slice %206 {offsets = [3, 0], sizes = [1, 32], strides = [1, 1]} : vector<4x32xf32> to vector<1x32xf32>
    %269 = vector.extract_strided_slice %179 {offsets = [3, 0], sizes = [1, 32], strides = [1, 1]} : vector<4x32xf32> to vector<1x32xf32>
    %270 = vector.extract_strided_slice %152 {offsets = [3, 0], sizes = [1, 32], strides = [1, 1]} : vector<4x32xf32> to vector<1x32xf32>
    %271 = vector.extract_strided_slice %125 {offsets = [3, 0], sizes = [1, 32], strides = [1, 1]} : vector<4x32xf32> to vector<1x32xf32>
    %272 = vector.extract_strided_slice %98 {offsets = [3, 0], sizes = [1, 32], strides = [1, 1]} : vector<4x32xf32> to vector<1x32xf32>
    %273 = vector.extract_strided_slice %71 {offsets = [3, 0], sizes = [1, 32], strides = [1, 1]} : vector<4x32xf32> to vector<1x32xf32>
    %274 = vector.extract_strided_slice %44 {offsets = [3, 0], sizes = [1, 32], strides = [1, 1]} : vector<4x32xf32> to vector<1x32xf32>
    %275 = tpu.concatenate %267, %268, %269, %270, %271, %272, %273, %274 in 0 : vector<1x32xf32>, vector<1x32xf32>, vector<1x32xf32>, vector<1x32xf32>, vector<1x32xf32>, vector<1x32xf32>, vector<1x32xf32>, vector<1x32xf32> -> vector<8x32xf32>
    %276 = tpu.concatenate %266, %275 in 1 : vector<8x32xf32>, vector<8x32xf32> -> vector<8x64xf32>
    %277 = vector.extract_strided_slice %234 {offsets = [0, 1, 0], sizes = [8, 1, 1], strides = [1, 1, 1]} : vector<8x2x1xf32> to vector<8x1x1xf32>
    %278 = vector.shape_cast %277 : vector<8x1x1xf32> to vector<8x1xf32>
    %279 = vector.broadcast %278 : vector<8x1xf32> to vector<8x64xf32>
    %280 = arith.mulf %276, %279 : vector<8x64xf32>
    %281 = tpu.concatenate %257, %280 in 0 : vector<8x64xf32>, vector<8x64xf32> -> vector<16x64xf32>
    %c0_29 = arith.constant 0 : index
    %c0_30 = arith.constant 0 : index
    %282 = vector.load %arg5[%c0_29, %c0_30] : memref<64x32xf32, #tpu.memory_space<vmem>>, vector<64x32xf32>
    %cst_31 = arith.constant dense<0.000000e+00> : vector<16x32xf32>
    %283 = tpu.matmul %281, %282, %cst_31 {dimension_numbers = #tpu.dot_dimension_numbers<[1], [0], [0], [1], [0, 0, 1, 1], [], []>} : vector<16x64xf32>, vector<64x32xf32>, vector<16x32xf32> -> vector<16x32xf32>
    %284 = math.tanh %283 : vector<16x32xf32>
    %c0_32 = arith.constant 0 : index
    %c0_33 = arith.constant 0 : index
    %285 = vector.load %arg6[%c0_32, %c0_33] : memref<32x8xf32, #tpu.memory_space<vmem>>, vector<32x8xf32>
    %cst_34 = arith.constant dense<0.000000e+00> : vector<16x8xf32>
    %286 = tpu.matmul %284, %285, %cst_34 {dimension_numbers = #tpu.dot_dimension_numbers<[1], [0], [0], [1], [0, 0, 1, 1], [], []>} : vector<16x32xf32>, vector<32x8xf32>, vector<16x8xf32> -> vector<16x8xf32>
    %c0_35 = arith.constant 0 : index
    %c0_36 = arith.constant 0 : index
    %287 = vector.load %arg7[%c0_35, %c0_36] : memref<8x2xf32, #tpu.memory_space<vmem>>, vector<8x2xf32>
    %c0_37 = arith.constant 0 : index
    %c0_38 = arith.constant 0 : index
    %288 = vector.load %arg8[%c0_37, %c0_38] : memref<1x2xf32, #tpu.memory_space<vmem>>, vector<1x2xf32>
    %c0_39 = arith.constant 0 : index
    %c0_40 = arith.constant 0 : index
    %289 = vector.load %arg9[%c0_39, %c0_40] : memref<64x2xf32, #tpu.memory_space<vmem>>, vector<64x2xf32>
    %c0_41 = arith.constant 0 : index
    %c0_42 = arith.constant 0 : index
    %290 = vector.load %arg10[%c0_41, %c0_42] : memref<1x2xf32, #tpu.memory_space<vmem>>, vector<1x2xf32>
    %291 = vector.extract_strided_slice %286 {offsets = [0, 0], sizes = [8, 8], strides = [1, 1]} : vector<16x8xf32> to vector<8x8xf32>
    %cst_43 = arith.constant dense<0xFF800000> : vector<8xf32>
    %292 = vector.multi_reduction <maximumf>, %291, %cst_43 [0] : vector<8x8xf32> to vector<8xf32>
    %293 = vector.shape_cast %292 : vector<8xf32> to vector<1x8xf32>
    %294 = vector.broadcast %293 : vector<1x8xf32> to vector<8x8xf32>
    %295 = arith.subf %291, %294 : vector<8x8xf32>
    %296 = math.exp %295 : vector<8x8xf32>
    %cst_44 = arith.constant dense<0.000000e+00> : vector<8xf32>
    %297 = vector.multi_reduction <add>, %296, %cst_44 [0] : vector<8x8xf32> to vector<8xf32>
    %298 = vector.shape_cast %297 : vector<8xf32> to vector<1x8xf32>
    %299 = vector.broadcast %298 : vector<1x8xf32> to vector<8x8xf32>
    %300 = arith.divf %296, %299 : vector<8x8xf32>
    %cst_45 = arith.constant dense<0.000000e+00> : vector<64x8xf32>
    %301 = tpu.matmul %257, %300, %cst_45 {dimension_numbers = #tpu.dot_dimension_numbers<[0], [0], [1], [1], [0, 1, 1, 1], [], []>} : vector<8x64xf32>, vector<8x8xf32>, vector<64x8xf32> -> vector<64x8xf32>
    %cst_46 = arith.constant dense<0.000000e+00> : vector<64x2xf32>
    %302 = tpu.matmul %301, %287, %cst_46 {dimension_numbers = #tpu.dot_dimension_numbers<[1], [0], [0], [1], [0, 0, 1, 1], [], []>} : vector<64x8xf32>, vector<8x2xf32>, vector<64x2xf32> -> vector<64x2xf32>
    %303 = vector.broadcast %288 : vector<1x2xf32> to vector<64x2xf32>
    %304 = arith.addf %302, %303 : vector<64x2xf32>
    %cst_47 = arith.constant 0.000000e+00 : f32
    %305 = vector.broadcast %cst_47 : f32 to vector<64x2xf32>
    %306 = arith.maximumf %304, %305 : vector<64x2xf32>
    %307 = arith.mulf %306, %289 : vector<64x2xf32>
    %cst_48 = arith.constant dense<0.000000e+00> : vector<2xf32>
    %308 = vector.multi_reduction <add>, %307, %cst_48 [0] : vector<64x2xf32> to vector<2xf32>
    %309 = vector.shape_cast %308 : vector<2xf32> to vector<1x2xf32>
    %310 = arith.addf %309, %290 : vector<1x2xf32>
    %311 = vector.extract_strided_slice %286 {offsets = [8, 0], sizes = [8, 8], strides = [1, 1]} : vector<16x8xf32> to vector<8x8xf32>
    %cst_49 = arith.constant dense<0xFF800000> : vector<8xf32>
    %312 = vector.multi_reduction <maximumf>, %311, %cst_49 [0] : vector<8x8xf32> to vector<8xf32>
    %313 = vector.shape_cast %312 : vector<8xf32> to vector<1x8xf32>
    %314 = vector.broadcast %313 : vector<1x8xf32> to vector<8x8xf32>
    %315 = arith.subf %311, %314 : vector<8x8xf32>
    %316 = math.exp %315 : vector<8x8xf32>
    %cst_50 = arith.constant dense<0.000000e+00> : vector<8xf32>
    %317 = vector.multi_reduction <add>, %316, %cst_50 [0] : vector<8x8xf32> to vector<8xf32>
    %318 = vector.shape_cast %317 : vector<8xf32> to vector<1x8xf32>
    %319 = vector.broadcast %318 : vector<1x8xf32> to vector<8x8xf32>
    %320 = arith.divf %316, %319 : vector<8x8xf32>
    %cst_51 = arith.constant dense<0.000000e+00> : vector<64x8xf32>
    %321 = tpu.matmul %280, %320, %cst_51 {dimension_numbers = #tpu.dot_dimension_numbers<[0], [0], [1], [1], [0, 1, 1, 1], [], []>} : vector<8x64xf32>, vector<8x8xf32>, vector<64x8xf32> -> vector<64x8xf32>
    %cst_52 = arith.constant dense<0.000000e+00> : vector<64x2xf32>
    %322 = tpu.matmul %321, %287, %cst_52 {dimension_numbers = #tpu.dot_dimension_numbers<[1], [0], [0], [1], [0, 0, 1, 1], [], []>} : vector<64x8xf32>, vector<8x2xf32>, vector<64x2xf32> -> vector<64x2xf32>
    %323 = vector.broadcast %288 : vector<1x2xf32> to vector<64x2xf32>
    %324 = arith.addf %322, %323 : vector<64x2xf32>
    %cst_53 = arith.constant 0.000000e+00 : f32
    %325 = vector.broadcast %cst_53 : f32 to vector<64x2xf32>
    %326 = arith.maximumf %324, %325 : vector<64x2xf32>
    %327 = arith.mulf %326, %289 : vector<64x2xf32>
    %cst_54 = arith.constant dense<0.000000e+00> : vector<2xf32>
    %328 = vector.multi_reduction <add>, %327, %cst_54 [0] : vector<64x2xf32> to vector<2xf32>
    %329 = vector.shape_cast %328 : vector<2xf32> to vector<1x2xf32>
    %330 = arith.addf %329, %290 : vector<1x2xf32>
    %331 = tpu.concatenate %310, %330 in 0 : vector<1x2xf32>, vector<1x2xf32> -> vector<2x2xf32>
    %c0_55 = arith.constant 0 : index
    %c0_56 = arith.constant 0 : index
    %332 = vector.load %arg11[%c0_55, %c0_56] : memref<2x2xf32, #tpu.memory_space<vmem>>, vector<2x2xf32>
    tpu.vector_store %arg11[%c0_55, %c0_56], %331 {strides = array<i32>} : memref<2x2xf32, #tpu.memory_space<vmem>>, vector<2x2xf32>,
    return
  }
}

</mosaic_0001>

<bundles_post_ra>
// kernel: multitask_bilstm_attention.1
= control target key start
LH: loop header
LB: loop body
LE: loop exit
PB: predicated region body
PF: predicated region fallthrough
CT: control target
= control target key end

     0   :  { %v2514_v3 = vmov 0.0   ;;  %vm56_vm0 = vcmask 130048   ;;  %v2515_v21 = vmov 0   ;;  %v46_v24 = vlaneseq  ;;  %s2517_s27 = smov 32   ;;  %s3079_s2 = inlined_call_operand.vmem [shape: f32[16,256], index: 2, kind: input, shape index: {}]   ;;  %s3080_s4 = inlined_call_operand.vmem [shape: f32[32,256], index: 4, kind: input, shape index: {}]   ;;  %s3081_s0 = inlined_call_operand.vmem [shape: f32[16,16], index: 0, kind: input, shape index: {}]   ;;  %s3082_s1 = inlined_call_operand.vmem [shape: f32[8,4,1], index: 1, kind: input, shape index: {}]   ;;  %s3083_s3 = inlined_call_operand.vmem [shape: f32[1,256], index: 3, kind: input, shape index: {}]   ;;  %s3084_s5 = inlined_call_operand.vmem [shape: f32[64,32], index: 5, kind: input, shape index: {}]   ;;  %s3085_s6 = inlined_call_operand.vmem [shape: f32[32,8], index: 6, kind: input, shape index: {}]   ;;  %s3086_s7 = inlined_call_operand.vmem [shape: f32[8,2], index: 7, kind: input, shape index: {}]   ;;  %s3087_s8 = inlined_call_operand.vmem [shape: f32[1,2], index: 8, kind: input, shape index: {}]   ;;  %s3088_s9 = inlined_call_operand.vmem [shape: f32[64,2], index: 9, kind: input, shape index: {}]   ;;  %s3089_s10 = inlined_call_operand.vmem [shape: f32[1,2], index: 10, kind: input, shape index: {}]   ;;  %s3090_s11 = inlined_call_operand.vmem [shape: f32[2,2], index: 11, kind: output, shape index: {}]  }
   0x1   :  { %v41_v0 = vld [vmem:[%s3079_s2 + $0x8] sm:$0xff]  ;;  %v43_v1 = vld [vmem:[%s3079_s2 + $0x18] sm:$0xff]  ;;  %v40_v2 = vld [vmem:[%s3079_s2] sm:$0xff]  ;;  %127 = vmatprep.mubr.f32.mxu0 %v2514_v3  ;;  %242 = vmatprep.mubr.f32.mxu1 %v2514_v3  ;;  %vm172_vm3 = vcmask 1041408   ;;  %vm174_vm5 = vcmask 261120  }
   0x2   :  { %v2340_v4 = vpack.c.bf16 %v43_v1, %v41_v0  ;;  %v42_v5 = vld [vmem:[%s3079_s2 + $0x10] sm:$0xff]  ;;  %v141_v6 = vld [vmem:[%s3080_s4 + $0x8] sm:$0xff]  ;;  %v143_v7 = vld [vmem:[%s3080_s4 + $0x18] sm:$0xff]  ;;  %2436 = vset.pattern.permute.xlu1 %v2515_v21  ;;  %2437 = vset.pattern.permute.xlu0 %v2515_v21  ;;  %v2657_v25 = vshrl.u32 %v46_v24, 7 }
   0x3   :  { %v2342_v8 = vpack.c.bf16 %v42_v5, %v40_v2  ;;  %v2598_v9 = vpack.c.bf16 %v143_v7, %v141_v6  ;;  %v140_v10 = vld [vmem:[%s3080_s4] sm:$0xff]  ;;  %v142_v11 = vld [vmem:[%s3080_s4 + $0x10] sm:$0xff]  ;;  %v145_v13 = vld [vmem:[%s3080_s4 + $0x28] sm:$0xff] }
   0x4   :  { %2341 = vmatprep.subr.bf16.mxu0 %v2340_v4  ;;  %v2606_v12 = vpack.c.bf16 %v142_v11, %v140_v10  ;;  %v147_v14 = vld [vmem:[%s3080_s4 + $0x38] sm:$0xff]  ;;  %v38_v15 = vld [vmem:[%s3081_s0] sm:$0xff]  ;;  %v146_v18 = vld [vmem:[%s3080_s4 + $0x30] sm:$0xff]  ;;  %v48_v26 = vsub.s32 0, %v2657_v25  ;;  %v52_v28 = vsub.s32 1, %v2657_v25  ;;  %vm150_vm2 = vcmp.lt.s32.totalorder %v2657_v25, 2 }
   0x5   :  { %2343 = vmatpush1.bf16.msra.mxu0 %v2342_v8  ;;  %2345 = vmatprep.subr.bf16.mxu1 %v2598_v9  ;;  %v2618_v16 = vpack.c.bf16 %v147_v14, %v145_v13  ;;  %v144_v17 = vld [vmem:[%s3080_s4 + $0x20] sm:$0xff]  ;;  %v39_v20 = vld [vmem:[%s3081_s0 + $0x8] sm:$0xff] }
   0x6   :  { %2347 = vmatpush1.bf16.msra.mxu1 %v2606_v12  ;;  %v2627_v19 = vpack.c.bf16 %v146_v18, %v144_v17  ;;  %2353 = vmatprep.subr.bf16.mxu0 %v2598_v9  ;;  %v2652_v22 = vld [vmem:[%s3082_s1] sm:$0xf] }
   0x7   :  { %2349 = vmatprep.subr.bf16.mxu1 %v2618_v16  ;;  %vm161_vm1 = vcmp.gt.f32.partialorder %v2652_v22, 0.5  ;;  %v44_v27 = vld [vmem:[%s3083_s3] sm:$0x3]  ;;  %s2516_s3 = smov 64  }
   0x8   :  { %2148 = vmatmul.mubr.msk.f32.vlgmr.msra.gmra.mrb[0].mxu0 %vm56_vm0, %v38_v15  ;;  %v275_v23 = vsel %vm161_vm1, 1, %v2515_v21  ;;  %v49_v29 = vrot.slane %v44_v27, %v48_v26  ;;  %v53_v30 = vrot.slane %v44_v27, %v52_v28  ;;  %v2706_v27 = vld [vmem:[%s3082_s1 + $0x4] sm:$0xf] }
   0x9   :  { %133 = vmatprep.mubr.f32.mxu0 %v2514_v3  ;;  %2355 = vmatpush1.bf16.msra.mxu0 %v2606_v12  ;;  %vm162_vm6 = vcmp.gt.f32.partialorder %v2706_v27, 0.5 }
   0xa   :  { %2351 = vmatpush1.bf16.msra.mxu1 %v2627_v19  ;;  %2357 = vmatprep.subr.bf16.mxu0 %v2618_v16 }
   0xb   :  { %2361 = vmatprep.subr.bf16.mxu1 %v2598_v9  ;;  %277 = vperm.xlu1 %2436, %v275_v23  }
   0xc   :  { %2149 = vmatmul.mubr.msk.f32.gmra.mrb[2].mxu0 %vm56_vm0, %v39_v20 }
   0xd   :  { %243 = vmatmul.mubr.f32.vlgmr.msra.gmra.mrb[0].mxu1 %v2514_v3  ;;  %2359 = vmatpush1.bf16.msra.mxu0 %v2627_v19 }
   0xe   :  { %357 = vmatprep.mubr.f32.mxu0 %v2514_v3  ;;  %2363 = vmatpush1.bf16.msra.mxu1 %v2606_v12 }
   0xf   :  { %2365 = vmatprep.subr.bf16.mxu1 %v2618_v16  ;;  %469 = vmatprep.mubr.f32.mxu1 %v2514_v3 }
  0x10   :  { %2369 = vmatprep.subr.bf16.mxu0 %v2598_v9 }
  0x12   :  { %2367 = vmatpush1.bf16.msra.mxu1 %v2627_v19 }
  0x13   :  { %2377 = vmatprep.subr.bf16.mxu1 %v2598_v9 }
  0x8a   :  { %v278_v13 = vpop.permute.xlu1 %277 }
  0x8b   :  { %vm279_vm4 = vcmp.eq.s32.totalorder %v278_v13, 1 }
  0xdb   :  { %v129_v31 = vpop.f32.mrb[0].mxu0 }
  0xdc   :  { %v130_v32 = vadd.f32 %v129_v31, %v49_v29  ;;  %v131_v33 = vpop.f32.mrb[1].mxu0 }
  0xdd   :  { %v132_v34 = vadd.f32 %v131_v33, %v53_v30 }
  0xde   :  { %v283_v40 = vrot.slane %v130_v32, 2  ;;  %v397_v43 = vrot.slane %v130_v32, 4  ;;  %v509_v44 = vrot.slane %v130_v32, 6 }
  0xdf   :  { %v135_v35 = vpop.f32.mrb[2].mxu0  ;;  %v624_v36 = vrot.slane %v132_v34, 4  ;;  %v739_v45 = vrot.slane %v132_v34, 2  ;;  %v965_v57 = vrot.slane %v132_v34, 6 }
  0xe0   :  { %v136_v37 = vadd.f32 %v135_v35, %v49_v29  ;;  %v137_v38 = vpop.f32.mrb[3].mxu0  ;;  %v244_v39 = vpop.f32.mrb[0].mxu1  ;;  %v390_v29 = vsel %vm162_vm6, 1, %v2515_v21  ;;  %vm1094_vm6 = vcmask 1042432  }
  0xe1   :  { %v138_v41 = vadd.f32 %v137_v38, %v53_v30  ;;  %v246_v42 = vpop.f32.mrb[1].mxu1 }
  0xe2   :  { %v249_v46 = vsel %vm150_vm2, %v244_v39, %v246_v42  ;;  %v2668_v47 = vsel %vm172_vm3, %v136_v37, %v624_v36  ;;  %v737_v48 = vrot.slane %v136_v37, 2  ;;  %v851_v49 = vrot.slane %v136_v37, 4 }
  0xe3   :  { %v170_v50 = vrot.slane %v138_v41, 4  ;;  %v285_v51 = vrot.slane %v138_v41, 2  ;;  %v2671_v52 = vsel %vm172_vm3, %v397_v43, %v138_v41  ;;  %v511_v53 = vrot.slane %v138_v41, 6 }
  0xe4   :  { %v2674_v54 = vsel %vm172_vm3, %v737_v48, %v739_v45  ;;  %v2677_v55 = vsel %vm172_vm3, %v851_v49, %v132_v34  ;;  %v963_v56 = vrot.slane %v136_v37, 6 }
  0xe5   :  { %v173_v58 = vsel %vm172_vm3, %v130_v32, %v170_v50  ;;  %v287_v59 = vsel %vm172_vm3, %v283_v40, %v285_v51  ;;  %v2682_v60 = vsel %vm172_vm3, %v509_v44, %v511_v53  ;;  %v2732_v51 = vld [vmem:[%s3082_s1 + $0x8] sm:$0xf] }
  0xe6   :  { %v250_v61 = vadd.f32 %v249_v46, %v173_v58  ;;  %v2685_v62 = vsel %vm172_vm3, %v963_v56, %v965_v57  ;;  %vm163_vm8 = vcmp.gt.f32.partialorder %v2732_v51, 0.5 }
  0xe7   :  { %v502_v56 = vsel %vm163_vm8, 1, %v2515_v21  ;;  %vm1098_vm8 = vcmask 1044480  }
  0xe8   :  { %2438 = vtanh.f32 %v250_v61  ;;  %v2150_v0 = vmul.f32 -1.442695, %v250_v61 }
  0xea   :  { %2440 = vpow2.f32 %v2150_v0 }
  0xf2   :  { %v2439_v63 = vpop.eup %2438 }
  0xf3   :  { %260 = vrot.lane.b32.xlu0 %v2439_v63, %s2516_s3 }
  0xf4   :  { %v2441_v1 = vpop.eup %2440 }
  0xf5   :  { %v254_v2 = vadd.f32 1.0, %v2441_v1 }
  0xf7   :  { %2442 = vrcp.f32 %v254_v2 }
 0x101   :  { %v2443_v4 = vpop.eup %2442 }
 0x102   :  { %v258_v7 = vmul.f32 0.0, %v2443_v4 }
 0x165   :  { %v261_v5 = vpop.permute.xlu0 %260 }
 0x166   :  { %v263_v6 = vmul.f32 %v2443_v4, %v261_v5 }
 0x168   :  { %265 = vrot.lane.b32.xlu0 %v263_v6, %s2517_s27 }
 0x1da   :  { %v266_v8 = vpop.permute.xlu0 %265 }
 0x1db   :  { %v268_v10 = vadd.f32 %v266_v8, %v258_v7 }
 0x1dd   :  { %2444 = vtanh.f32 %v268_v10  ;;  %v281_v36 = vsel %vm279_vm4, %v268_v10, 0.0 }
 0x1e7   :  { %v2445_v11 = vpop.eup %2444 }
 0x1e8   :  { %271 = vrot.lane.b32.xlu1 %v2445_v11, %s2516_s3 }
 0x25a   :  { %v272_v14 = vpop.permute.xlu1 %271 }
 0x25b   :  { %v274_v15 = vmul.f32 %v2443_v4, %v272_v14 }
 0x25d   :  { %v2691_v17 = vsel %vm279_vm4, %v274_v15, 0.0 }
 0x25e   :  { %289 = vrot.lane.b32.xlu0 %v2691_v17, %s2517_s27 }
 0x2d0   :  { %v290_v18 = vpop.permute.xlu0 %289 }
 0x2d1   :  { %2151 = vmatmul.mubr.msk.f32.vlgmr.msra.gmra.mrb[4].mxu0 %vm174_vm5, %v290_v18 }
 0x2d2   :  { %2371 = vmatpush1.bf16.msra.mxu0 %v2606_v12  ;;  %583 = vmatprep.mubr.f32.mxu0 %v2514_v3 }
 0x2d3   :  { %2373 = vmatprep.subr.bf16.mxu0 %v2618_v16 }
 0x2d6   :  { %2375 = vmatpush1.bf16.msra.mxu0 %v2627_v19 }
 0x2d7   :  { %2385 = vmatprep.subr.bf16.mxu0 %v2598_v9 }
 0x3a4   :  { %v359_v20 = vpop.f32.mrb[4].mxu0 }
 0x3a5   :  { %v361_v23 = vpop.f32.mrb[5].mxu0 }
 0x3a6   :  { %v364_v24 = vsel %vm150_vm2, %v359_v20, %v361_v23  ;;  %v2758_v20 = vld [vmem:[%s3082_s1 + $0xc] sm:$0xf] }
 0x3a7   :  { %v365_v26 = vadd.f32 %v364_v24, %v287_v59  ;;  %vm164_vm10 = vcmp.gt.f32.partialorder %v2758_v20, 0.5 }
 0x3a9   :  { %2446 = vtanh.f32 %v365_v26  ;;  %v2152_v30 = vmul.f32 -1.442695, %v365_v26 }
 0x3ab   :  { %2448 = vpow2.f32 %v2152_v30 }
 0x3b3   :  { %v2447_v28 = vpop.eup %2446 }
 0x3b4   :  { %375 = vrot.lane.b32.xlu1 %v2447_v28, %s2516_s3 }
 0x3b5   :  { %v2449_v31 = vpop.eup %2448 }
 0x3b6   :  { %v369_v32 = vadd.f32 1.0, %v2449_v31 }
 0x3b8   :  { %392 = vperm.xlu1 %2436, %v390_v29   ;;  %2450 = vrcp.f32 %v369_v32 }
 0x3c2   :  { %v2451_v33 = vpop.eup %2450 }
 0x3c3   :  { %v373_v37 = vmul.f32 %v2451_v33, %v281_v36 }
 0x426   :  { %v376_v34 = vpop.permute.xlu1 %375 }
 0x427   :  { %v378_v35 = vmul.f32 %v2451_v33, %v376_v34 }
 0x429   :  { %380 = vrot.lane.b32.xlu0 %v378_v35, %s2517_s27 }
 0x437   :  { %v393_v41 = vpop.permute.xlu1 %392 }
 0x438   :  { %vm394_vm7 = vcmp.eq.s32.totalorder %v393_v41, 1 }
 0x49b   :  { %v381_v38 = vpop.permute.xlu0 %380 }
 0x49c   :  { %v383_v39 = vadd.f32 %v381_v38, %v373_v37 }
 0x49e   :  { %2452 = vtanh.f32 %v383_v39  ;;  %v396_v0 = vsel %vm394_vm7, %v383_v39, %v281_v36 }
 0x4a8   :  { %v2453_v40 = vpop.eup %2452 }
 0x4a9   :  { %386 = vrot.lane.b32.xlu0 %v2453_v40, %s2516_s3 }
 0x51b   :  { %v387_v42 = vpop.permute.xlu0 %386 }
 0x51c   :  { %v389_v43 = vmul.f32 %v2451_v33, %v387_v42 }
 0x51e   :  { %v2716_v44 = vsel %vm394_vm7, %v389_v43, %v2691_v17  ;;  %vm1096_vm7 = vcmask 1043456  }
 0x51f   :  { %401 = vrot.lane.b32.xlu1 %v2716_v44, %s2517_s27 }
 0x591   :  { %v402_v45 = vpop.permute.xlu1 %401 }
 0x592   :  { %2153 = vmatmul.mubr.msk.f32.vlgmr.msra.gmra.mrb[2].mxu1 %vm174_vm5, %v402_v45 }
 0x593   :  { %2379 = vmatpush1.bf16.msra.mxu1 %v2606_v12  ;;  %696 = vmatprep.mubr.f32.mxu1 %v2514_v3 }
 0x594   :  { %2381 = vmatprep.subr.bf16.mxu1 %v2618_v16 }
 0x597   :  { %2383 = vmatpush1.bf16.msra.mxu1 %v2627_v19 }
 0x598   :  { %2393 = vmatprep.subr.bf16.mxu1 %v2598_v9 }
 0x665   :  { %v471_v46 = vpop.f32.mrb[2].mxu1 }
 0x666   :  { %v473_v48 = vpop.f32.mrb[3].mxu1 }
 0x667   :  { %v476_v49 = vsel %vm150_vm2, %v471_v46, %v473_v48  ;;  %v2783_v46 = vld [vmem:[%s3082_s1 + $0x10] sm:$0xf] }
 0x668   :  { %v477_v50 = vadd.f32 %v476_v49, %v2671_v52  ;;  %vm165_vm12 = vcmp.gt.f32.partialorder %v2783_v46, 0.5 }
 0x669   :  { %v729_v49 = vsel %vm165_vm12, 1, %v2515_v21  ;;  %vm1170_vm12 = vcmask 1042434  }
 0x66a   :  { %2454 = vtanh.f32 %v477_v50  ;;  %v2154_v57 = vmul.f32 -1.442695, %v477_v50 }
 0x66c   :  { %2456 = vpow2.f32 %v2154_v57 }
 0x674   :  { %v2455_v53 = vpop.eup %2454 }
 0x675   :  { %487 = vrot.lane.b32.xlu0 %v2455_v53, %s2516_s3 }
 0x676   :  { %v2457_v58 = vpop.eup %2456 }
 0x677   :  { %v481_v59 = vadd.f32 1.0, %v2457_v58 }
 0x679   :  { %504 = vperm.xlu0 %2437, %v502_v56   ;;  %2458 = vrcp.f32 %v481_v59 }
 0x683   :  { %v2459_v52 = vpop.eup %2458 }
 0x684   :  { %v485_v1 = vmul.f32 %v2459_v52, %v396_v0 }
 0x6e7   :  { %v488_v61 = vpop.permute.xlu0 %487 }
 0x6e8   :  { %v490_v63 = vmul.f32 %v2459_v52, %v488_v61 }
 0x6ea   :  { %492 = vrot.lane.b32.xlu1 %v490_v63, %s2517_s27 }
 0x6f8   :  { %v505_v6 = vpop.permute.xlu0 %504 }
 0x6f9   :  { %vm506_vm9 = vcmp.eq.s32.totalorder %v505_v6, 1 }
 0x75c   :  { %v493_v2 = vpop.permute.xlu1 %492 }
 0x75d   :  { %v495_v4 = vadd.f32 %v493_v2, %v485_v1 }
 0x75f   :  { %2460 = vtanh.f32 %v495_v4  ;;  %v508_v31 = vsel %vm506_vm9, %v495_v4, %v396_v0 }
 0x769   :  { %v2461_v5 = vpop.eup %2460 }
 0x76a   :  { %498 = vrot.lane.b32.xlu1 %v2461_v5, %s2516_s3 }
 0x7dc   :  { %v499_v7 = vpop.permute.xlu1 %498 }
 0x7dd   :  { %v501_v8 = vmul.f32 %v2459_v52, %v499_v7 }
 0x7df   :  { %v2742_v10 = vsel %vm506_vm9, %v501_v8, %v2716_v44 }
 0x7e0   :  { %515 = vrot.lane.b32.xlu1 %v2742_v10, %s2517_s27 }
 0x852   :  { %v516_v11 = vpop.permute.xlu1 %515 }
 0x853   :  { %2155 = vmatmul.mubr.msk.f32.vlgmr.msra.gmra.mrb[6].mxu0 %vm174_vm5, %v516_v11 }
 0x854   :  { %2387 = vmatpush1.bf16.msra.mxu0 %v2606_v12  ;;  %811 = vmatprep.mubr.f32.mxu0 %v2514_v3 }
 0x855   :  { %2389 = vmatprep.subr.bf16.mxu0 %v2618_v16 }
 0x858   :  { %2391 = vmatpush1.bf16.msra.mxu0 %v2627_v19 }
 0x859   :  { %2401 = vmatprep.subr.bf16.mxu0 %v2598_v9  ;;  %v616_v9 = vsel %vm164_vm10, 1, %v2515_v21  ;;  %vm1100_vm10 = vcmask 1045504  }
 0x926   :  { %v585_v13 = vpop.f32.mrb[6].mxu0 }
 0x927   :  { %v587_v14 = vpop.f32.mrb[7].mxu0 }
 0x928   :  { %v590_v15 = vsel %vm150_vm2, %v585_v13, %v587_v14  ;;  %v2808_v14 = vld [vmem:[%s3082_s1 + $0x14] sm:$0xf] }
 0x929   :  { %v591_v18 = vadd.f32 %v590_v15, %v2682_v60  ;;  %vm166_vm14 = vcmp.gt.f32.partialorder %v2808_v14, 0.5 }
 0x92b   :  { %2462 = vtanh.f32 %v591_v18  ;;  %v2156_v24 = vmul.f32 -1.442695, %v591_v18 }
 0x92d   :  { %2464 = vpow2.f32 %v2156_v24 }
 0x935   :  { %v2463_v23 = vpop.eup %2462 }
 0x936   :  { %601 = vrot.lane.b32.xlu0 %v2463_v23, %s2516_s3 }
 0x937   :  { %v2465_v26 = vpop.eup %2464 }
 0x938   :  { %v595_v28 = vadd.f32 1.0, %v2465_v26 }
 0x93a   :  { %618 = vperm.xlu0 %2437, %v616_v9   ;;  %2466 = vrcp.f32 %v595_v28 }
 0x944   :  { %v2467_v60 = vpop.eup %2466 }
 0x945   :  { %v599_v32 = vmul.f32 %v2467_v60, %v508_v31 }
 0x9a8   :  { %v602_v29 = vpop.permute.xlu0 %601 }
 0x9a9   :  { %v604_v30 = vmul.f32 %v2467_v60, %v602_v29 }
 0x9ab   :  { %606 = vrot.lane.b32.xlu1 %v604_v30, %s2517_s27 }
 0x9b9   :  { %v619_v36 = vpop.permute.xlu0 %618 }
 0x9ba   :  { %vm620_vm11 = vcmp.eq.s32.totalorder %v619_v36, 1 }
 0xa1d   :  { %v607_v33 = vpop.permute.xlu1 %606 }
 0xa1e   :  { %v609_v34 = vadd.f32 %v607_v33, %v599_v32 }
 0xa20   :  { %2468 = vtanh.f32 %v609_v34  ;;  %v622_v59 = vsel %vm620_vm11, %v609_v34, %v508_v31 }
 0xa2a   :  { %v2469_v35 = vpop.eup %2468 }
 0xa2b   :  { %612 = vrot.lane.b32.xlu1 %v2469_v35, %s2516_s3 }
 0xa9d   :  { %v613_v37 = vpop.permute.xlu1 %612 }
 0xa9e   :  { %v615_v38 = vmul.f32 %v2467_v60, %v613_v37 }
 0xaa0   :  { %v2768_v39 = vsel %vm620_vm11, %v615_v38, %v2742_v10  ;;  %v159_v38 = vld [vmem:[%s3082_s1 + $0x18] sm:$0xf]  ;;  %vm1102_vm11 = vcmask 1046528  }
 0xaa1   :  { %628 = vrot.lane.b32.xlu0 %v2768_v39, %s2517_s27  ;;  %vm167_vm0 = vcmp.gt.f32.partialorder %v159_v38, 0.5 }
 0xb13   :  { %v629_v40 = vpop.permute.xlu0 %628 }
 0xb14   :  { %2157 = vmatmul.mubr.msk.f32.vlgmr.msra.gmra.mrb[4].mxu1 %vm174_vm5, %v629_v40 }
 0xb15   :  { %2395 = vmatpush1.bf16.msra.mxu1 %v2606_v12  ;;  %923 = vmatprep.mubr.f32.mxu1 %v2514_v3 }
 0xb16   :  { %2397 = vmatprep.subr.bf16.mxu1 %v2618_v16 }
 0xb19   :  { %2399 = vmatpush1.bf16.msra.mxu1 %v2627_v19 }
 0xbe7   :  { %v698_v41 = vpop.f32.mrb[4].mxu1 }
 0xbe8   :  { %v700_v42 = vpop.f32.mrb[5].mxu1 }
 0xbe9   :  { %v703_v43 = vsel %vm150_vm2, %v698_v41, %v700_v42  ;;  %v956_v41 = vsel %vm167_vm0, 1, %v2515_v21  ;;  %vm1182_vm0 = vcmask 1046534  }
 0xbea   :  { %v704_v45 = vadd.f32 %v703_v43, %v2668_v47 }
 0xbec   :  { %2470 = vtanh.f32 %v704_v45  ;;  %v2158_v50 = vmul.f32 -1.442695, %v704_v45 }
 0xbee   :  { %2472 = vpow2.f32 %v2158_v50 }
 0xbf6   :  { %v2471_v48 = vpop.eup %2470 }
 0xbf7   :  { %714 = vrot.lane.b32.xlu1 %v2471_v48, %s2516_s3 }
 0xbf8   :  { %v2473_v53 = vpop.eup %2472 }
 0xbf9   :  { %v708_v56 = vadd.f32 1.0, %v2473_v53 }
 0xbfb   :  { %731 = vperm.xlu1 %2436, %v729_v49   ;;  %2474 = vrcp.f32 %v708_v56 }
 0xc05   :  { %v2475_v47 = vpop.eup %2474 }
 0xc06   :  { %v712_v52 = vmul.f32 %v2475_v47, %v622_v59 }
 0xc69   :  { %v715_v57 = vpop.permute.xlu1 %714 }
 0xc6a   :  { %v717_v58 = vmul.f32 %v2475_v47, %v715_v57 }
 0xc6c   :  { %719 = vrot.lane.b32.xlu0 %v717_v58, %s2517_s27 }
 0xc7a   :  { %v732_v1 = vpop.permute.xlu1 %731 }
 0xc7b   :  { %vm733_vm13 = vcmp.eq.s32.totalorder %v732_v1, 1 }
 0xcde   :  { %v720_v61 = vpop.permute.xlu0 %719 }
 0xcdf   :  { %v722_v63 = vadd.f32 %v720_v61, %v712_v52 }
 0xce1   :  { %2476 = vtanh.f32 %v722_v63  ;;  %v735_v9 = vsel %vm733_vm13, %v722_v63, %v622_v59 }
 0xceb   :  { %v2477_v0 = vpop.eup %2476 }
 0xcec   :  { %725 = vrot.lane.b32.xlu0 %v2477_v0, %s2516_s3 }
 0xd5e   :  { %v726_v2 = vpop.permute.xlu0 %725 }
 0xd5f   :  { %v728_v4 = vmul.f32 %v2475_v47, %v726_v2 }
 0xd61   :  { %v2793_v5 = vsel %vm733_vm13, %v728_v4, %v2768_v39  ;;  %vm1173_vm13 = vcmask 1043459  }
 0xd62   :  { %743 = vrot.lane.b32.xlu1 %v2793_v5, %s2517_s27 }
 0xdd4   :  { %v744_v6 = vpop.permute.xlu1 %743 }
 0xdd5   :  { %2159 = vmatmul.mubr.msk.f32.vlgmr.msra.gmra.mrb[8].mxu0 %vm174_vm5, %v744_v6  ;;  %v160_v6 = vld [vmem:[%s3082_s1 + $0x1c] sm:$0xf] }
 0xdd6   :  { %2403 = vmatpush1.bf16.msra.mxu0 %v2606_v12  ;;  %1037 = vmatprep.mubr.f32.mxu0 %v2514_v3  ;;  %v844_v12 = vsel %vm166_vm14, 1, %v2515_v21  ;;  %vm168_vm4 = vcmp.gt.f32.partialorder %v160_v6, 0.5  ;;  %vm1176_vm14 = vcmask 1044484  }
 0xdd7   :  { %2405 = vmatprep.subr.bf16.mxu0 %v2618_v16 }
 0xdda   :  { %2407 = vmatpush1.bf16.msra.mxu0 %v2627_v19 }
 0xea8   :  { %v813_v7 = vpop.f32.mrb[8].mxu0 }
 0xea9   :  { %v815_v8 = vpop.f32.mrb[9].mxu0 }
 0xeaa   :  { %v818_v11 = vsel %vm150_vm2, %v813_v7, %v815_v8  ;;  %v1070_v8 = vsel %vm168_vm4, 1, %v2515_v21  ;;  %vm1256_vm4 = vcmask 523264  }
 0xeab   :  { %v819_v13 = vadd.f32 %v818_v11, %v2674_v54 }
 0xead   :  { %2478 = vtanh.f32 %v819_v13  ;;  %v2160_v16 = vmul.f32 -1.442695, %v819_v13 }
 0xeaf   :  { %2480 = vpow2.f32 %v2160_v16 }
 0xeb7   :  { %v2479_v3 = vpop.eup %2478 }
 0xeb8   :  { %829 = vrot.lane.b32.xlu0 %v2479_v3, %s2516_s3 }
 0xeb9   :  { %v2481_v19 = vpop.eup %2480 }
 0xeba   :  { %v823_v15 = vadd.f32 1.0, %v2481_v19 }
 0xebc   :  { %846 = vperm.xlu0 %2437, %v844_v12   ;;  %2482 = vrcp.f32 %v823_v15  ;;  %v1249_v15 = vld [vmem:[%s3084_s5 + $0x8] sm:$0xff] }
 0xec6   :  { %v2483_v54 = vpop.eup %2482 }
 0xec7   :  { %v827_v24 = vmul.f32 %v2483_v54, %v735_v9 }
 0xf2a   :  { %v830_v18 = vpop.permute.xlu0 %829 }
 0xf2b   :  { %v832_v23 = vmul.f32 %v2483_v54, %v830_v18  ;;  %v1076_v18 = vrot.slane %v2716_v44, 7 }
 0xf2d   :  { %834 = vrot.lane.b32.xlu1 %v832_v23, %s2517_s27  ;;  %v1078_v23 = vrot.slane %v2742_v10, 6 }
 0xf3b   :  { %v847_v29 = vpop.permute.xlu0 %846 }
 0xf3c   :  { %vm848_vm15 = vcmp.eq.s32.totalorder %v847_v29, 1  ;;  %v1082_v29 = vrot.slane %v2793_v5, 4 }
 0xf9f   :  { %v835_v26 = vpop.permute.xlu1 %834 }
 0xfa0   :  { %v837_v28 = vadd.f32 %v835_v26, %v827_v24  ;;  %v1189_v24 = vrot.slane %v2691_v17, 1  ;;  %v1080_v26 = vrot.slane %v2768_v39, 5 }
 0xfa2   :  { %2484 = vtanh.f32 %v837_v28  ;;  %v850_v50 = vsel %vm848_vm15, %v837_v28, %v735_v9  ;;  %v1191_v9 = vrot.slane %v2742_v10, 7  ;;  %v1252_v28 = vld [vmem:[%s3084_s5 + $0x20] sm:$0xff] }
 0xfac   :  { %v2485_v60 = vpop.eup %2484 }
 0xfad   :  { %840 = vrot.lane.b32.xlu1 %v2485_v60, %s2516_s3  ;;  %v1253_v60 = vld [vmem:[%s3084_s5 + $0x28] sm:$0xff] }
0x101f   :  { %v841_v30 = vpop.permute.xlu1 %840 }
0x1020   :  { %v843_v31 = vmul.f32 %v2483_v54, %v841_v30  ;;  %v2416_v30 = vpack.c.bf16 %v1253_v60, %v1252_v28 }
0x1022   :  { %v2818_v32 = vsel %vm848_vm15, %v843_v31, %v2793_v5  ;;  %vm1179_vm15 = vcmask 1045509  }
0x1023   :  { %855 = vrot.lane.b32.xlu0 %v2818_v32, %s2517_s27 }
0x1095   :  { %v856_v33 = vpop.permute.xlu0 %855 }
0x1096   :  { %2161 = vmatmul.mubr.msk.f32.vlgmr.msra.gmra.mrb[6].mxu1 %vm174_vm5, %v856_v33 }
0x1169   :  { %v925_v34 = vpop.f32.mrb[6].mxu1 }
0x116a   :  { %v927_v35 = vpop.f32.mrb[7].mxu1 }
0x116b   :  { %v930_v36 = vsel %vm150_vm2, %v925_v34, %v927_v35  ;;  %v1084_v34 = vrot.slane %v2818_v32, 3 }
0x116c   :  { %v931_v37 = vadd.f32 %v930_v36, %v2677_v55  ;;  %v1110_v36 = vrot.slane %v2768_v39, 6 }
0x116e   :  { %2486 = vtanh.f32 %v931_v37  ;;  %v2162_v42 = vmul.f32 -1.442695, %v931_v37 }
0x1170   :  { %2488 = vpow2.f32 %v2162_v42 }
0x1178   :  { %v2487_v40 = vpop.eup %2486 }
0x1179   :  { %941 = vrot.lane.b32.xlu1 %v2487_v40, %s2516_s3 }
0x117a   :  { %v2489_v43 = vpop.eup %2488 }
0x117b   :  { %v935_v45 = vadd.f32 1.0, %v2489_v43 }
0x117d   :  { %958 = vperm.xlu1 %2436, %v956_v41   ;;  %2490 = vrcp.f32 %v935_v45  ;;  %v1193_v45 = vrot.slane %v2793_v5, 5 }
0x1187   :  { %v2491_v48 = vpop.eup %2490 }
0x1188   :  { %v939_v53 = vmul.f32 %v2491_v48, %v850_v50 }
0x11eb   :  { %v942_v49 = vpop.permute.xlu1 %941 }
0x11ec   :  { %v944_v55 = vmul.f32 %v2491_v48, %v942_v49  ;;  %v1255_v49 = vld [vmem:[%s3084_s5 + $0x38] sm:$0xff] }
0x11ee   :  { %946 = vrot.lane.b32.xlu0 %v944_v55, %s2517_s27 }
0x11fc   :  { %v959_v58 = vpop.permute.xlu1 %958 }
0x11fd   :  { %vm960_vm1 = vcmp.eq.s32.totalorder %v959_v58, 1 }
0x1260   :  { %v947_v56 = vpop.permute.xlu0 %946 }
0x1261   :  { %v949_v47 = vadd.f32 %v947_v56, %v939_v53 }
0x1263   :  { %2492 = vtanh.f32 %v949_v47  ;;  %v962_v21 = vsel %vm960_vm1, %v949_v47, %v850_v50  ;;  %v1195_v47 = vrot.slane %v2818_v32, 4 }
0x126d   :  { %v2493_v57 = vpop.eup %2492 }
0x126e   :  { %952 = vrot.lane.b32.xlu0 %v2493_v57, %s2516_s3 }
0x12e0   :  { %v953_v59 = vpop.permute.xlu0 %952 }
0x12e1   :  { %v955_v52 = vmul.f32 %v2491_v48, %v953_v59  ;;  %v1254_v48 = vld [vmem:[%s3084_s5 + $0x30] sm:$0xff] }
0x12e2   :  { %v2420_v50 = vpack.c.bf16 %v1255_v49, %v1254_v48 }
0x12e3   :  { %v2836_v61 = vsel %vm960_vm1, %v955_v52, %v2818_v32  ;;  %vm1185_vm1 = vcmask 1047559  }
0x12e4   :  { %969 = vrot.lane.b32.xlu1 %v2836_v61, %s2517_s27  ;;  %v1086_v42 = vrot.slane %v2836_v61, 2  ;;  %v1106_v57 = vrot.slane %v2836_v61, 1 }
0x1356   :  { %v970_v63 = vpop.permute.xlu1 %969 }
0x1357   :  { %2163 = vmatmul.mubr.msk.f32.vlgmr.msra.gmra.mrb[10].mxu0 %vm174_vm5, %v970_v63  ;;  %v1208_v63 = vrot.slane %v2818_v32, 1 }
0x142a   :  { %v1039_v0 = vpop.f32.mrb[10].mxu0 }
0x142b   :  { %v1041_v1 = vpop.f32.mrb[11].mxu0 }
0x142c   :  { %v1044_v2 = vsel %vm150_vm2, %v1039_v0, %v1041_v1  ;;  %vm1091_vm2 = vcmask 1040384   ;;  %v1197_v1 = vrot.slane %v2836_v61, 3 }
0x142d   :  { %v1045_v4 = vadd.f32 %v1044_v2, %v2685_v62  ;;  %v1199_v31 = vsel %vm1091_vm2, %v1189_v24, %v2716_v44  ;;  %v1092_v35 = vsel %vm1091_vm2, %v2691_v17, %v1076_v18 }
0x142e   :  { %v1200_v40 = vsel %vm172_vm3, %v1199_v31, %v1191_v9 }
0x142f   :  { %2494 = vtanh.f32 %v1045_v4  ;;  %v2164_v25 = vmul.f32 -1.442695, %v1045_v4  ;;  %v1201_v2 = vsel %vm1094_vm6, %v1200_v40, %v1110_v36  ;;  %v1108_v4 = vrot.slane %v2793_v5, 7 }
0x1431   :  { %2496 = vpow2.f32 %v2164_v25  ;;  %v1210_v25 = vrot.slane %v2768_v39, 7 }
0x1439   :  { %v2495_v7 = vpop.eup %2494 }
0x143a   :  { %1055 = vrot.lane.b32.xlu0 %v2495_v7, %s2516_s3 }
0x143b   :  { %v2497_v62 = vpop.eup %2496 }
0x143c   :  { %v1049_v11 = vadd.f32 1.0, %v2497_v62  ;;  %v1202_v62 = vsel %vm1096_vm7, %v1201_v2, %v1193_v45 }
0x143e   :  { %1072 = vperm.xlu0 %2437, %v1070_v8   ;;  %2498 = vrcp.f32 %v1049_v11 }
0x1442   :  { %1140 = vperm.xlu0 %2437, %v2706_v27  }
0x1446   :  { %1144 = vperm.xlu0 %2437, %v2732_v51  }
0x1448   :  { %v2499_v13 = vpop.eup %2498 }
0x1449   :  { %v1053_v16 = vmul.f32 %v2499_v13, %v962_v21 }
0x144a   :  { %1152 = vperm.xlu0 %2437, %v2783_v46   ;;  %v1248_v46 = vld [vmem:[%s3084_s5] sm:$0xff] }
0x144b   :  { %v2408_v54 = vpack.c.bf16 %v1249_v15, %v1248_v46 }
0x144d   :  { %2409 = vmatprep.subr.bf16.mxu1 %v2408_v54 }
0x144e   :  { %1160 = vperm.xlu0 %2437, %v159_v38   ;;  %2411 = vmatpush3.bf16.msra.mxu1 %v2408_v54  ;;  %v1093_v38 = vsel %vm172_vm3, %v1092_v35, %v1078_v23  ;;  %v1212_v54 = vrot.slane %v2716_v44, 5 }
0x144f   :  { %v1095_v43 = vsel %vm1094_vm6, %v1093_v38, %v1080_v26 }
0x1450   :  { %v1097_v55 = vsel %vm1096_vm7, %v1095_v43, %v1082_v29 }
0x1451   :  { %v1099_v56 = vsel %vm1098_vm8, %v1097_v55, %v1084_v34 }
0x1452   :  { %v1101_v0 = vsel %vm1100_vm10, %v1099_v56, %v1086_v42 }
0x14ac   :  { %v1056_v3 = vpop.permute.xlu0 %1055 }
0x14ad   :  { %v1058_v12 = vmul.f32 %v2499_v13, %v1056_v3  ;;  %v1112_v3 = vrot.slane %v2742_v10, 5 }
0x14af   :  { %1060 = vrot.lane.b32.xlu1 %v1058_v12, %s2517_s27 }
0x14bd   :  { %v1073_v33 = vpop.permute.xlu0 %1072 }
0x14be   :  { %vm1074_vm9 = vcmp.eq.s32.totalorder %v1073_v33, 1 }
0x14c1   :  { %v1141_v10 = vpop.permute.xlu0 %1140 }
0x14c2   :  { %v1166_v26 = vrot.slane %v1141_v10, 7 }
0x14c5   :  { %v1145_v9 = vpop.permute.xlu0 %1144 }
0x14c6   :  { %v1169_v31 = vrot.slane %v1145_v9, 6 }
0x14c9   :  { %v1153_v28 = vpop.permute.xlu0 %1152 }
0x14ca   :  { %v1175_v38 = vrot.slane %v1153_v28, 4 }
0x14cd   :  { %v1161_v40 = vpop.permute.xlu0 %1160 }
0x1521   :  { %v1061_v19 = vpop.permute.xlu1 %1060 }
0x1522   :  { %v1063_v27 = vadd.f32 %v1061_v19, %v1053_v16  ;;  %v1114_v16 = vrot.slane %v2716_v44, 4 }
0x1524   :  { %2500 = vtanh.f32 %v1063_v27 }
0x152e   :  { %v2501_v51 = vpop.eup %2500 }
0x152f   :  { %1066 = vrot.lane.b32.xlu1 %v2501_v51, %s2516_s3  ;;  %v1116_v51 = vrot.slane %v2691_v17, 3 }
0x1533   :  { %1136 = vperm.xlu1 %2436, %v2652_v22   ;;  %v1250_v22 = vld [vmem:[%s3084_s5 + $0x10] sm:$0xff] }
0x1537   :  { %1148 = vperm.xlu1 %2436, %v2758_v20   ;;  %v1251_v20 = vld [vmem:[%s3084_s5 + $0x18] sm:$0xff] }
0x153b   :  { %1156 = vperm.xlu1 %2436, %v2808_v14   ;;  %v2412_v14 = vpack.c.bf16 %v1251_v20, %v1250_v22 }
0x153d   :  { %2413 = vmatprep.subr.bf16.mxu1 %v2412_v14 }
0x153e   :  { %2415 = vmatpush3.bf16.msra.mxu1 %v2412_v14  ;;  %v1214_v14 = vrot.slane %v2691_v17, 4 }
0x153f   :  { %1164 = vperm.xlu1 %2436, %v160_v6   ;;  %2417 = vmatprep.subr.bf16.mxu1 %v2416_v30 }
0x1542   :  { %2419 = vmatpush3.bf16.msra.mxu1 %v2416_v30 }
0x1543   :  { %2421 = vmatprep.subr.bf16.mxu1 %v2420_v50 }
0x1546   :  { %2423 = vmatpush3.bf16.msra.mxu1 %v2420_v50  ;;  %v1238_v50 = vrot.slane %v1153_v28, 5 }
0x15a1   :  { %v1067_v37 = vpop.permute.xlu1 %1066 }
0x15a2   :  { %v1069_v41 = vmul.f32 %v2499_v13, %v1067_v37  ;;  %v1203_v13 = vsel %vm1098_vm8, %v1202_v62, %v1195_v47  ;;  %v1234_v37 = vrot.slane %v1145_v9, 7 }
0x15a3   :  { %v1204_v39 = vsel %vm1100_vm10, %v1203_v13, %v1197_v1  ;;  %v1242_v1 = vrot.slane %v1161_v40, 3  ;;  %v1342_v13 = vld [vmem:[%s3085_s6 + $0x10] sm:$0xff] }
0x15a4   :  { %v1075_v53 = vsel %vm1074_vm9, %v1069_v41, %v2836_v61 }
0x15a5   :  { %v1206_v58 = vrot.slane %v1075_v53, 3  ;;  %v1089_v59 = vrot.slane %v1075_v53, 1  ;;  %v1104_v52 = vrot.slane %v1075_v53, 2  ;;  %v1181_v53 = vrot.slane %v1161_v40, 2 }
0x15a7   :  { %v1103_v6 = vsel %vm1102_vm11, %v1101_v0, %v1089_v59  ;;  %v1216_v7 = vsel %vm1091_vm2, %v1206_v58, %v1086_v42  ;;  %v1118_v8 = vsel %vm1091_vm2, %v1104_v52, %v1106_v57 }
0x15a8   :  { %1126 = vrot.lane.b32.xlu0 %v1103_v6, %s2517_s27  ;;  %v1119_v61 = vsel %vm172_vm3, %v1118_v8, %v2818_v32  ;;  %v1217_v11 = vsel %vm172_vm3, %v1216_v7, %v1208_v63  ;;  %v1205_v32 = vsel %vm1102_vm11, %v1204_v39, %v1104_v52  ;;  %vm1167_vm3 = vcmask 1041409  }
0x15a9   :  { %v1120_v12 = vsel %vm1094_vm6, %v1119_v61, %v1108_v4  ;;  %v1218_v21 = vsel %vm1094_vm6, %v1217_v11, %v2793_v5  ;;  %v1340_v61 = vld [vmem:[%s3085_s6] sm:$0xff]  ;;  %v1341_v11 = vld [vmem:[%s3085_s6 + $0x8] sm:$0xff]  ;;  %vm1436_vm6 = vcmask 64512  }
0x15aa   :  { %v1121_v19 = vsel %vm1096_vm7, %v1120_v12, %v1110_v36  ;;  %v1219_v27 = vsel %vm1096_vm7, %v1218_v21, %v1210_v25  ;;  %v1343_v12 = vld [vmem:[%s3085_s6 + $0x18] sm:$0xff]  ;;  %vm2142_vm7 = vcmask 9216  }
0x15ab   :  { %v1122_v46 = vsel %vm1098_vm8, %v1121_v19, %v1112_v3  ;;  %v1220_v15 = vsel %vm1098_vm8, %v1219_v27, %v1078_v23  ;;  %v2424_v3 = vpack.c.bf16 %v1341_v11, %v1340_v61  ;;  %v2428_v21 = vpack.c.bf16 %v1343_v12, %v1342_v13  ;;  %v1425_v13 = vld [vmem:[%s3086_s7] sm:$0xff] }
0x15ac   :  { %1224 = vrot.lane.b32.xlu0 %v1205_v32, %s2517_s27  ;;  %v1123_v5 = vsel %vm1100_vm10, %v1122_v46, %v1114_v16  ;;  %v1221_v20 = vsel %vm1100_vm10, %v1220_v15, %v1212_v54  ;;  %2298 = vmatprep.subr.mxu1 %v1425_v13 }
0x15ad   :  { %v1124_v22 = vsel %vm1102_vm11, %v1123_v5, %v1116_v51  ;;  %v1222_v18 = vsel %vm1102_vm11, %v1221_v20, %v1214_v14  ;;  %2425 = vmatprep.subr.bf16.mxu0 %v2424_v3 }
0x15ae   :  { %1130 = vrot.lane.b32.xlu1 %v1124_v22, %s2516_s3  ;;  %2427 = vmatpush3.bf16.msra.mxu0 %v2424_v3 }
0x15af   :  { %2429 = vmatprep.subr.bf16.mxu0 %v2428_v21 }
0x15b2   :  { %1228 = vrot.lane.b32.xlu1 %v1222_v18, %s2516_s3  ;;  %v1137_v23 = vpop.permute.xlu1 %1136  ;;  %2431 = vmatpush3.bf16.msra.mxu0 %v2428_v21 }
0x15b3   :  { %v1168_v60 = vsel %vm1167_vm3, %v1166_v26, %v1137_v23  ;;  %v1232_v29 = vrot.slane %v1137_v23, 1 }
0x15b4   :  { %v1171_v17 = vsel %vm1170_vm12, %v1169_v31, %v1168_v60 }
0x15b5   :  { %v1233_v33 = vsel %vm1167_vm3, %v1141_v10, %v1232_v29 }
0x15b6   :  { %v1149_v24 = vpop.permute.xlu1 %1148  ;;  %v1235_v42 = vsel %vm1170_vm12, %v1234_v37, %v1233_v33 }
0x15b7   :  { %v1172_v30 = vrot.slane %v1149_v24, 5  ;;  %v1236_v35 = vrot.slane %v1149_v24, 6 }
0x15b9   :  { %v1174_v34 = vsel %vm1173_vm13, %v1172_v30, %v1171_v17  ;;  %v1237_v45 = vsel %vm1173_vm13, %v1236_v35, %v1235_v42 }
0x15ba   :  { %v1157_v44 = vpop.permute.xlu1 %1156  ;;  %v1177_v43 = vsel %vm1176_vm14, %v1175_v38, %v1174_v34  ;;  %v1239_v47 = vsel %vm1176_vm14, %v1238_v50, %v1237_v45 }
0x15bb   :  { %v1178_v36 = vrot.slane %v1157_v44, 3  ;;  %v1240_v49 = vrot.slane %v1157_v44, 4 }
0x15bd   :  { %v1180_v48 = vsel %vm1179_vm15, %v1178_v36, %v1177_v43  ;;  %v1241_v59 = vsel %vm1179_vm15, %v1240_v49, %v1239_v47 }
0x15be   :  { %v1165_v41 = vpop.permute.xlu1 %1164  ;;  %v1183_v57 = vsel %vm1182_vm0, %v1181_v53, %v1180_v48  ;;  %v1243_v6 = vsel %vm1182_vm0, %v1242_v1, %v1241_v59 }
0x15bf   :  { %v1184_v55 = vrot.slane %v1165_v41, 1  ;;  %v1244_v52 = vrot.slane %v1165_v41, 2 }
0x15c1   :  { %v1186_v63 = vsel %vm1185_vm1, %v1184_v55, %v1183_v57  ;;  %v1245_v8 = vsel %vm1185_vm1, %v1244_v52, %v1243_v6 }
0x161a   :  { %v1127_v56 = vpop.permute.xlu0 %1126 }
0x161e   :  { %v1225_v4 = vpop.permute.xlu0 %1224 }
0x1620   :  { %v1131_v58 = vpop.permute.xlu1 %1130 }
0x1621   :  { %v1133_v0 = vsel %vm174_vm5, %v1127_v56, %v1131_v58 }
0x1622   :  { %v1188_v2 = vmul.f32 %v1186_v63, %v1133_v0 }
0x1624   :  { %1456 = vxpose.xlu0.b32.start.end [1/1] (short) (narrow) %v1188_v2, 64  ;;  %2270 = vmatprep.mubr.msk.f32.mxu1 %vm1256_vm4, %v1188_v2  ;;  %v1229_v7 = vpop.permute.xlu1 %1228 }
0x1625   :  { %v1231_v25 = vsel %vm174_vm5, %v1225_v4, %v1229_v7 }
0x1626   :  { %v1247_v62 = vmul.f32 %v1245_v8, %v1231_v25 }
0x1628   :  { %1810 = vxpose.xlu1.b32.start.end [1/1] (short) (narrow) %v1247_v62, 64  ;;  %2271 = vmatmul.mubr.msk.f32.vlgmr.msra.gmra.mrb[8].mxu1 %vm1256_vm4, %v1247_v62 }
0x1629   :  { %2299 = vmatpush3.msra.mxu1 %v1425_v13 }
0x162a   :  { %2326 = vmatprep.subr.mxu1 %v1425_v13 }
0x16a4   :  { %v1472_v32 = vpop.trf.xlu0 }
0x16a8   :  { %v1473_v38 = vpop.trf.xlu0  ;;  %v1826_v47 = vpop.trf.xlu1 }
0x16ac   :  { %v1474_v49 = vpop.trf.xlu0  ;;  %v1827_v58 = vpop.trf.xlu1 }
0x16b0   :  { %v1475_v57 = vpop.trf.xlu0  ;;  %v1828_v0 = vpop.trf.xlu1 }
0x16b4   :  { %v1476_v59 = vpop.trf.xlu0  ;;  %v1829_v6 = vpop.trf.xlu1 }
0x16b8   :  { %v1477_v2 = vpop.trf.xlu0  ;;  %v1830_v8 = vpop.trf.xlu1 }
0x16bc   :  { %v1478_v7 = vpop.trf.xlu0  ;;  %v1831_v62 = vpop.trf.xlu1 }
0x16c0   :  { %v1479_v25 = vpop.trf.xlu0  ;;  %v1832_v61 = vpop.trf.xlu1 }
0x16c4   :  { %v1833_v11 = vpop.trf.xlu1 }
0x16fb   :  { %v2272_v39 = vpop.f32.mrb[8].mxu1 }
0x16fc   :  { %v1329_v16 = vpop.f32.mrb[9].mxu1 }
0x16fd   :  { %2502 = vtanh.f32 %v1329_v16 }
0x16fe   :  { %2504 = vtanh.f32 %v2272_v39 }
0x1707   :  { %v2503_v19 = vpop.eup %2502 }
0x1708   :  { %v2505_v27 = vpop.eup %2504  ;;  %2281 = vmatprep.mubr.msk.f32.mxu0 %vm174_vm5, %v2503_v19 }
0x1709   :  { %2282 = vmatmul.mubr.msk.f32.vlgmr.msra.gmra.mrb[12].mxu0 %vm174_vm5, %v2505_v27  ;;  %vm1768_vm5 = vcmask 15360  }
0x170a   :  { %2286 = vmatprep.mubr.msk.f32.mxu0 %vm1436_vm6, %v1472_v32 }
0x17dc   :  { %v2283_v51 = vpop.f32.mrb[12].mxu0 }
0x17dd   :  { %v1791_v46 = vsel %vm1436_vm6, %v2283_v51, -inf  ;;  %v1416_v15 = vpop.f32.mrb[13].mxu0 }
0x17de   :  { %v1792_v5 = vrot.slane %v1791_v46, 4  ;;  %v1437_v54 = vsel %vm1436_vm6, %v1416_v15, -inf }
0x17df   :  { %v1438_v22 = vrot.slane %v1437_v54, 4 }
0x17e0   :  { %v1793_v20 = vmax.f32 %v1791_v46, %v1792_v5 }
0x17e1   :  { %v1439_v14 = vmax.f32 %v1437_v54, %v1438_v22 }
0x17e2   :  { %v1794_v18 = vrot.slane %v1793_v20, 2 }
0x17e3   :  { %v1440_v10 = vrot.slane %v1439_v14, 2 }
0x17e4   :  { %v1795_v23 = vmax.f32 %v1793_v20, %v1794_v18  ;;  %v3014_v18 = vld [vmem:[%s3087_s8] ss:$0 sm:$0xff] }
0x17e5   :  { %v1441_v9 = vmax.f32 %v1439_v14, %v1440_v10 }
0x17e6   :  { %v1796_v24 = vrot.slane %v1795_v23, 1 }
0x17e7   :  { %v1442_v26 = vrot.slane %v1441_v9, 1 }
0x17e8   :  { %v1797_v28 = vmax.f32 %v1795_v23, %v1796_v24  ;;  %v1428_v24 = vld [vmem:[%s3088_s9 + $0x8] sm:$0xff] }
0x17e9   :  { %v1443_v44 = vmax.f32 %v1441_v9, %v1442_v26 }
0x17ea   :  { %v1798_v60 = vsub.f32 %v2283_v51, %v1797_v28 }
0x17eb   :  { %v1444_v29 = vsub.f32 %v1416_v15, %v1443_v44  ;;  %v1427_v44 = vld [vmem:[%s3088_s9] sm:$0xff] }
0x17ec   :  { %v1799_v30 = vmul.f32 1.442695, %v1798_v60 }
0x17ed   :  { %v1445_v31 = vmul.f32 1.442695, %v1444_v29 }
0x17ee   :  { %2506 = vpow2.f32 %v1799_v30 }
0x17ef   :  { %2508 = vpow2.f32 %v1445_v31 }
0x17f8   :  { %v2507_v17 = vpop.eup %2506 }
0x17f9   :  { %v2509_v33 = vpop.eup %2508  ;;  %v1801_v34 = vsel %vm1436_vm6, %v2507_v17, 0.0 }
0x17fa   :  { %v1802_v35 = vrot.slane %v1801_v34, 4  ;;  %v1447_v36 = vsel %vm1436_vm6, %v2509_v33, 0.0 }
0x17fb   :  { %v1448_v37 = vrot.slane %v1447_v36, 4 }
0x17fc   :  { %v1803_v40 = vadd.f32 %v1802_v35, %v1801_v34 }
0x17fd   :  { %v1449_v41 = vadd.f32 %v1448_v37, %v1447_v36  ;;  %v1430_v36 = vld [vmem:[%s3088_s9 + $0x18] sm:$0xff] }
0x17fe   :  { %v1804_v42 = vrot.slane %v1803_v40, 2 }
0x17ff   :  { %v1450_v43 = vrot.slane %v1449_v41, 2 }
0x1800   :  { %v1805_v45 = vadd.f32 %v1804_v42, %v1803_v40 }
0x1801   :  { %v1451_v48 = vadd.f32 %v1450_v43, %v1449_v41 }
0x1802   :  { %v1806_v55 = vrot.slane %v1805_v45, 1 }
0x1803   :  { %v1452_v50 = vrot.slane %v1451_v48, 1 }
0x1804   :  { %v1807_v53 = vadd.f32 %v1806_v55, %v1805_v45 }
0x1805   :  { %v1453_v56 = vadd.f32 %v1452_v50, %v1451_v48 }
0x1806   :  { %2510 = vrcp.f32 %v1807_v53  ;;  %v1432_v53 = vld [vmem:[%s3088_s9 + $0x28] sm:$0xff] }
0x1807   :  { %2512 = vrcp.f32 %v1453_v56 }
0x1810   :  { %v2511_v52 = vpop.eup %2510 }
0x1811   :  { %v2513_v63 = vpop.eup %2512  ;;  %v1809_v4 = vmul.f32 %v2511_v52, %v2507_v17 }
0x1812   :  { %v1455_v1 = vmul.f32 %v2513_v63, %v2509_v33 }
0x1814   :  { %2284 = vmatprep.subr.mxu0 %v1455_v1 }
0x1815   :  { %2285 = vmatpush3.msra.mxu0 %v1455_v1 }
0x1816   :  { %2287 = vmatmul.mubr.msk.f32.vlgmr.msra.gmra.mrb[14].mxu0 %vm1436_vm6, %v1473_v38  ;;  %2312 = vmatprep.subr.mxu0 %v1809_v4  ;;  %v1429_v38 = vld [vmem:[%s3088_s9 + $0x10] sm:$0xff] }
0x1817   :  { %2289 = vmatprep.mubr.msk.f32.mxu0 %vm1436_vm6, %v1474_v49  ;;  %2313 = vmatpush3.msra.mxu0 %v1809_v4 }
0x181a   :  { %2290 = vmatmul.mubr.msk.f32.gmra.mrb[16].mxu0 %vm1436_vm6, %v1475_v57 }
0x181b   :  { %2292 = vmatprep.mubr.msk.f32.mxu0 %vm1436_vm6, %v1476_v59 }
0x181e   :  { %2293 = vmatmul.mubr.msk.f32.gmra.mrb[18].mxu0 %vm1436_vm6, %v1477_v2 }
0x181f   :  { %2295 = vmatprep.mubr.msk.f32.mxu0 %vm1436_vm6, %v1478_v7 }
0x1822   :  { %2296 = vmatmul.mubr.msk.f32.gmra.mrb[20].mxu0 %vm1436_vm6, %v1479_v25 }
0x1823   :  { %2314 = vmatprep.mubr.msk.f32.mxu0 %vm1436_vm6, %v1826_v47  ;;  %v1431_v47 = vld [vmem:[%s3088_s9 + $0x20] sm:$0xff] }
0x1826   :  { %2315 = vmatmul.mubr.msk.f32.vlgmr.msra.gmra.mrb[22].mxu0 %vm1436_vm6, %v1827_v58 }
0x1827   :  { %2317 = vmatprep.mubr.msk.f32.mxu0 %vm1436_vm6, %v1828_v0 }
0x182a   :  { %2318 = vmatmul.mubr.msk.f32.gmra.mrb[24].mxu0 %vm1436_vm6, %v1829_v6 }
0x182b   :  { %2320 = vmatprep.mubr.msk.f32.mxu0 %vm1436_vm6, %v1830_v8  ;;  %v1434_v8 = vld [vmem:[%s3088_s9 + $0x38] sm:$0xff] }
0x182e   :  { %2321 = vmatmul.mubr.msk.f32.gmra.mrb[26].mxu0 %vm1436_vm6, %v1831_v62  ;;  %v1433_v62 = vld [vmem:[%s3088_s9 + $0x30] sm:$0xff] }
0x182f   :  { %2323 = vmatprep.mubr.msk.f32.mxu0 %vm1436_vm6, %v1832_v61 }
0x1832   :  { %2324 = vmatmul.mubr.msk.f32.gmra.mrb[28].mxu0 %vm1436_vm6, %v1833_v11 }
0x18e9   :  { %v2288_v3 = vpop.f32.mrb[14].mxu0 }
0x18ea   :  { %v1578_v12 = vpop.f32.mrb[15].mxu0 }
0x18eb   :  { %2300 = vmatprep.mubr.msk.f32.mxu1 %vm1436_vm6, %v1578_v12 }
0x18ec   :  { %2301 = vmatmul.mubr.msk.f32.vlgmr.msra.gmra.mrb[10].mxu1 %vm1436_vm6, %v2288_v3 }
0x18ed   :  { %v2291_v21 = vpop.f32.mrb[16].mxu0  ;;  %2327 = vmatpush3.msra.mxu1 %v1425_v13 }
0x18ee   :  { %v1588_v39 = vpop.f32.mrb[17].mxu0 }
0x18ef   :  { %2303 = vmatprep.mubr.msk.f32.mxu1 %vm1436_vm6, %v1588_v39 }
0x18f0   :  { %2304 = vmatmul.mubr.msk.f32.gmra.mrb[12].mxu1 %vm1436_vm6, %v2291_v21 }
0x18f1   :  { %v2294_v16 = vpop.f32.mrb[18].mxu0 }
0x18f2   :  { %v1598_v19 = vpop.f32.mrb[19].mxu0 }
0x18f3   :  { %2306 = vmatprep.mubr.msk.f32.mxu1 %vm1436_vm6, %v1598_v19 }
0x18f4   :  { %2307 = vmatmul.mubr.msk.f32.gmra.mrb[14].mxu1 %vm1436_vm6, %v2294_v16 }
0x18f5   :  { %v2297_v27 = vpop.f32.mrb[20].mxu0 }
0x18f6   :  { %v1608_v32 = vpop.f32.mrb[21].mxu0 }
0x18f7   :  { %2309 = vmatprep.mubr.msk.f32.mxu1 %vm1436_vm6, %v1608_v32 }
0x18f8   :  { %2310 = vmatmul.mubr.msk.f32.gmra.mrb[16].mxu1 %vm1436_vm6, %v2297_v27 }
0x18f9   :  { %v2316_v51 = vpop.f32.mrb[22].mxu0 }
0x18fa   :  { %v1932_v46 = vpop.f32.mrb[23].mxu0 }
0x18fb   :  { %2328 = vmatprep.mubr.msk.f32.mxu1 %vm1436_vm6, %v1932_v46 }
0x18fc   :  { %2329 = vmatmul.mubr.msk.f32.vlgmr.msra.gmra.mrb[18].mxu1 %vm1436_vm6, %v2316_v51 }
0x18fd   :  { %v2319_v15 = vpop.f32.mrb[24].mxu0 }
0x18fe   :  { %v1942_v5 = vpop.f32.mrb[25].mxu0 }
0x18ff   :  { %2331 = vmatprep.mubr.msk.f32.mxu1 %vm1436_vm6, %v1942_v5 }
0x1900   :  { %2332 = vmatmul.mubr.msk.f32.gmra.mrb[20].mxu1 %vm1436_vm6, %v2319_v15 }
0x1901   :  { %v2322_v54 = vpop.f32.mrb[26].mxu0 }
0x1902   :  { %v1952_v22 = vpop.f32.mrb[27].mxu0 }
0x1903   :  { %2334 = vmatprep.mubr.msk.f32.mxu1 %vm1436_vm6, %v1952_v22 }
0x1904   :  { %2335 = vmatmul.mubr.msk.f32.gmra.mrb[22].mxu1 %vm1436_vm6, %v2322_v54 }
0x1905   :  { %v2325_v20 = vpop.f32.mrb[28].mxu0 }
0x1906   :  { %v1962_v14 = vpop.f32.mrb[29].mxu0 }
0x1907   :  { %2337 = vmatprep.mubr.msk.f32.mxu1 %vm1436_vm6, %v1962_v14 }
0x1908   :  { %2338 = vmatmul.mubr.msk.f32.gmra.mrb[24].mxu1 %vm1436_vm6, %v2325_v20 }
0x19bf   :  { %v2302_v10 = vpop.f32.mrb[10].mxu1 }
0x19c0   :  { %v1719_v23 = vadd.f32 %v2302_v10, %v3014_v18  ;;  %v1713_v9 = vpop.f32.mrb[11].mxu1 }
0x19c1   :  { %v1714_v26 = vadd.f32 %v3014_v18, %v1713_v9 }
0x19c2   :  { %v1753_v28 = vmax.f32 %v1719_v23, 0.0 }
0x19c3   :  { %v1752_v60 = vmax.f32 %v1714_v26, 0.0  ;;  %v2305_v29 = vpop.f32.mrb[12].mxu1 }
0x19c4   :  { %v1761_v30 = vmul.f32 %v1753_v28, %v1428_v24  ;;  %v1729_v31 = vadd.f32 %v2305_v29, %v3014_v18  ;;  %v1723_v17 = vpop.f32.mrb[13].mxu1 }
0x19c5   :  { %v1760_v33 = vmul.f32 %v1752_v60, %v1427_v44  ;;  %v1724_v34 = vadd.f32 %v3014_v18, %v1723_v17 }
0x19c6   :  { %v1770_v35 = vsel %vm1768_vm5, %v1761_v30, 0.0  ;;  %v1755_v37 = vmax.f32 %v1729_v31, 0.0 }
0x19c7   :  { %v1769_v40 = vsel %vm1768_vm5, %v1760_v33, 0.0  ;;  %v1754_v41 = vmax.f32 %v1724_v34, 0.0  ;;  %v2308_v42 = vpop.f32.mrb[14].mxu1 }
0x19c8   :  { %v1771_v43 = vadd.f32 %v1770_v35, %v1769_v40  ;;  %v1739_v45 = vadd.f32 %v2308_v42, %v3014_v18  ;;  %v1733_v48 = vpop.f32.mrb[15].mxu1  ;;  %v1763_v49 = vmul.f32 %v1755_v37, %v1430_v36 }
0x19c9   :  { %v1762_v55 = vmul.f32 %v1754_v41, %v1429_v38  ;;  %v1734_v50 = vadd.f32 %v3014_v18, %v1733_v48 }
0x19ca   :  { %v1757_v56 = vmax.f32 %v1739_v45, 0.0  ;;  %v1774_v1 = vsel %vm1768_vm5, %v1763_v49, 0.0 }
0x19cb   :  { %v1772_v57 = vsel %vm1768_vm5, %v1762_v55, 0.0  ;;  %v1756_v58 = vmax.f32 %v1734_v50, 0.0  ;;  %v2311_v59 = vpop.f32.mrb[16].mxu1 }
0x19cc   :  { %v1773_v52 = vadd.f32 %v1772_v57, %v1771_v43  ;;  %v1749_v63 = vadd.f32 %v2311_v59, %v3014_v18  ;;  %v1743_v0 = vpop.f32.mrb[17].mxu1  ;;  %v1765_v2 = vmul.f32 %v1757_v56, %v1432_v53 }
0x19cd   :  { %v1764_v4 = vmul.f32 %v1756_v58, %v1431_v47  ;;  %v1744_v6 = vadd.f32 %v3014_v18, %v1743_v0 }
0x19ce   :  { %v1775_v7 = vadd.f32 %v1774_v1, %v1773_v52  ;;  %v1759_v25 = vmax.f32 %v1749_v63, 0.0  ;;  %v1778_v39 = vsel %vm1768_vm5, %v1765_v2, 0.0 }
0x19cf   :  { %v1776_v61 = vsel %vm1768_vm5, %v1764_v4, 0.0  ;;  %v1758_v11 = vmax.f32 %v1744_v6, 0.0  ;;  %v2330_v13 = vpop.f32.mrb[18].mxu1 }
0x19d0   :  { %v1777_v3 = vadd.f32 %v1776_v61, %v1775_v7  ;;  %v2067_v12 = vadd.f32 %v2330_v13, %v3014_v18  ;;  %v2061_v21 = vpop.f32.mrb[19].mxu1  ;;  %v1767_v16 = vmul.f32 %v1759_v25, %v1434_v8 }
0x19d1   :  { %v1766_v19 = vmul.f32 %v1758_v11, %v1433_v62  ;;  %v2062_v27 = vadd.f32 %v3014_v18, %v2061_v21 }
0x19d2   :  { %v1779_v32 = vadd.f32 %v1778_v39, %v1777_v3  ;;  %v2101_v51 = vmax.f32 %v2067_v12, 0.0  ;;  %v1782_v10 = vsel %vm1768_vm5, %v1767_v16, 0.0 }
0x19d3   :  { %v1780_v46 = vsel %vm1768_vm5, %v1766_v19, 0.0  ;;  %v2100_v15 = vmax.f32 %v2062_v27, 0.0  ;;  %v2333_v5 = vpop.f32.mrb[20].mxu1 }
0x19d4   :  { %v1781_v54 = vadd.f32 %v1780_v46, %v1779_v32  ;;  %v2109_v22 = vmul.f32 %v2101_v51, %v1428_v24  ;;  %v2077_v20 = vadd.f32 %v2333_v5, %v3014_v18  ;;  %v2071_v14 = vpop.f32.mrb[21].mxu1 }
0x19d5   :  { %v2108_v23 = vmul.f32 %v2100_v15, %v1427_v44  ;;  %v2072_v9 = vadd.f32 %v3014_v18, %v2071_v14 }
0x19d6   :  { %v1783_v26 = vadd.f32 %v1782_v10, %v1781_v54  ;;  %v2117_v28 = vsel %vm1768_vm5, %v2109_v22, 0.0  ;;  %v2103_v60 = vmax.f32 %v2077_v20, 0.0 }
0x19d7   :  { %v2116_v29 = vsel %vm1768_vm5, %v2108_v23, 0.0  ;;  %v2102_v30 = vmax.f32 %v2072_v9, 0.0  ;;  %v2336_v31 = vpop.f32.mrb[22].mxu1 }
0x19d8   :  { %v2118_v17 = vadd.f32 %v2117_v28, %v2116_v29  ;;  %v2087_v33 = vadd.f32 %v2336_v31, %v3014_v18  ;;  %v2081_v24 = vpop.f32.mrb[23].mxu1  ;;  %v2111_v34 = vmul.f32 %v2103_v60, %v1430_v36  ;;  %v1784_v57 = vrot.slane %v1783_v26, 4 }
0x19d9   :  { %v2110_v35 = vmul.f32 %v2102_v30, %v1429_v38  ;;  %v2082_v37 = vadd.f32 %v3014_v18, %v2081_v24 }
0x19da   :  { %v2105_v40 = vmax.f32 %v2087_v33, 0.0  ;;  %v2121_v49 = vsel %vm1768_vm5, %v2111_v34, 0.0  ;;  %v1785_v2 = vadd.f32 %v1784_v57, %v1783_v26 }
0x19db   :  { %v2119_v44 = vsel %vm1768_vm5, %v2110_v35, 0.0  ;;  %v2104_v41 = vmax.f32 %v2082_v37, 0.0  ;;  %v2339_v42 = vpop.f32.mrb[24].mxu1 }
0x19dc   :  { %v2120_v43 = vadd.f32 %v2119_v44, %v2118_v17  ;;  %v2097_v45 = vadd.f32 %v2339_v42, %v3014_v18  ;;  %v2091_v48 = vpop.f32.mrb[25].mxu1  ;;  %v2113_v55 = vmul.f32 %v2105_v40, %v1432_v53 }
0x19dd   :  { %v2112_v50 = vmul.f32 %v2104_v41, %v1431_v47  ;;  %v2092_v56 = vadd.f32 %v3014_v18, %v2091_v48  ;;  %v1786_v47 = vrot.slane %v1785_v2, 2 }
0x19de   :  { %v2122_v36 = vadd.f32 %v2121_v49, %v2120_v43  ;;  %v2107_v38 = vmax.f32 %v2097_v45, 0.0  ;;  %v2125_v63 = vsel %vm1768_vm5, %v2113_v55, 0.0 }
0x19df   :  { %v2123_v58 = vsel %vm1768_vm5, %v2112_v50, 0.0  ;;  %v2106_v59 = vmax.f32 %v2092_v56, 0.0  ;;  %v1787_v61 = vadd.f32 %v1786_v47, %v1785_v2 }
0x19e0   :  { %v2124_v52 = vadd.f32 %v2123_v58, %v2122_v36  ;;  %v2115_v0 = vmul.f32 %v2107_v38, %v1434_v8  ;;  %v1435_v8 = vld [vmem:[%s3089_s10] sm:$0x1] }
0x19e1   :  { %v2114_v1 = vmul.f32 %v2106_v59, %v1433_v62  ;;  %v1788_v3 = vrot.slane %v1787_v61, 1 }
0x19e2   :  { %v2126_v4 = vadd.f32 %v2125_v63, %v2124_v52  ;;  %v2129_v53 = vsel %vm1768_vm5, %v2115_v0, 0.0 }
0x19e3   :  { %v2127_v6 = vsel %vm1768_vm5, %v2114_v1, 0.0  ;;  %v1789_v39 = vadd.f32 %v1788_v3, %v1787_v61 }
0x19e4   :  { %v2128_v7 = vadd.f32 %v2127_v6, %v2126_v4 }
0x19e5   :  { %v1790_v19 = vadd.f32 %v1789_v39, %v1435_v8 }
0x19e6   :  { %v2130_v18 = vadd.f32 %v2129_v53, %v2128_v7 }
0x19e8   :  { %v2131_v25 = vrot.slane %v2130_v18, 4 }
0x19ea   :  { %v2132_v11 = vadd.f32 %v2131_v25, %v2130_v18 }
0x19ec   :  { %v2133_v13 = vrot.slane %v2132_v11, 2 }
0x19ee   :  { %v2134_v12 = vadd.f32 %v2133_v13, %v2132_v11 }
0x19f0   :  { %v2135_v21 = vrot.slane %v2134_v12, 1 }
0x19f2   :  { %v2136_v16 = vadd.f32 %v2135_v21, %v2134_v12 }
0x19f4   :  { %v2137_v62 = vadd.f32 %v2136_v16, %v1435_v8 }
0x19f6   :  { %v2139_v27 = vrot.slane %v2137_v62, 7 }
0x19f8   :  { %v2141_v32 = vsel %vm1091_vm2, %v1790_v19, %v2139_v27 }
0x19f9   :  { %2143 = vst.msk [vmem:[%s3090_s11] sm:$0x3] %vm2142_vm7, %v2141_v32 }

</bundles_post_ra>
